<compile_context>
chip_gen: v7x
topology: tpu7x:2x2x1
jax: 0.10.0
libtpu: 0.0.40
codegen_flags: <defaults>
</compile_context>

<pallas_src>
import functools

import jax
import jax.numpy as jnp
from jax.experimental import pallas as pl
from jax.experimental.pallas import tpu as pltpu

IN_FEATURES = 784
HIDDEN = 300
OUT_FEATURES = 10
# Lane-friendly padded sizes (multiples of 128). Zero padding keeps the math
# identical: padded hidden units are ReLU(0)=0 and padded w2 rows/cols are 0.
HIDDEN_PAD = 384
OUT_PAD = 128


def _mlp_kernel(x_ref, w1_ref, b1_ref, w2_ref, b2_ref, o_ref):
    # bf16 MXU matmuls with f32 accumulation; bias add + ReLU in f32 on the VPU.
    h = jnp.dot(x_ref[...], w1_ref[...],
                preferred_element_type=jnp.float32)          # (TB, 384) f32
    h = jnp.maximum(h + b1_ref[...], 0.0)                    # bias + ReLU
    # dropout (eval mode) == identity
    out = jnp.dot(h.astype(jnp.bfloat16), w2_ref[...],
                  preferred_element_type=jnp.float32)        # (TB, 128) f32
    o_ref[...] = (out + b2_ref[...]).astype(o_ref.dtype)


def _round_up(n, m):
    return (n + m - 1) // m * m


@functools.partial(jax.jit, static_argnames=("block_b",))
def mlp_forward(x, w1, b1, w2, b2, *, block_b=512):
    """x: (B, 1, 28, 28) or (B, 784). w1: (784, 300), w2: (300, 10). -> (B, 10)."""
    x2d = x.reshape(-1, IN_FEATURES)
    batch = x2d.shape[0]

    # Batch tile: a multiple of 128 rows (full MXU row occupancy), capped so the
    # double-buffered bf16 x tile (<1 MiB at TB=512) + resident weights stay far
    # below every generation's scoped VMEM limit.
    tb = min(block_b, _round_up(batch, 128))
    b_pad = _round_up(batch, tb)

    # bf16 inputs / weights, zero-padded to lane-dense shapes; f32 biases.
    x_p = jnp.zeros((b_pad, IN_FEATURES), jnp.bfloat16).at[:batch].set(
        x2d.astype(jnp.bfloat16))
    w1_p = jnp.zeros((IN_FEATURES, HIDDEN_PAD), jnp.bfloat16).at[:, :HIDDEN].set(
        w1.astype(jnp.bfloat16))
    b1_p = jnp.zeros((1, HIDDEN_PAD), jnp.float32).at[:, :HIDDEN].set(
        b1.reshape(1, -1).astype(jnp.float32))
    w2_p = jnp.zeros((HIDDEN_PAD, OUT_PAD), jnp.bfloat16).at[:HIDDEN, :OUT_FEATURES].set(
        w2.astype(jnp.bfloat16))
    b2_p = jnp.zeros((1, OUT_PAD), jnp.float32).at[:, :OUT_FEATURES].set(
        b2.reshape(1, -1).astype(jnp.float32))

    grid = (b_pad // tb,)

    flops = 2 * b_pad * (IN_FEATURES * HIDDEN_PAD + HIDDEN_PAD * OUT_PAD)
    bytes_accessed = (x_p.size * 2 + w1_p.size * 2 + w2_p.size * 2
                      + b1_p.size * 4 + b2_p.size * 4 + b_pad * OUT_PAD * 4)

    out_padded = pl.pallas_call(
        _mlp_kernel,
        out_shape=jax.ShapeDtypeStruct((b_pad, OUT_PAD), jnp.float32),
        grid=grid,
        in_specs=[
            pl.BlockSpec((tb, IN_FEATURES), lambda i: (i, 0)),        # x tile
            pl.BlockSpec((IN_FEATURES, HIDDEN_PAD), lambda i: (0, 0)),  # w1 (resident)
            pl.BlockSpec((1, HIDDEN_PAD), lambda i: (0, 0)),          # b1 (resident)
            pl.BlockSpec((HIDDEN_PAD, OUT_PAD), lambda i: (0, 0)),    # w2 (resident)
            pl.BlockSpec((1, OUT_PAD), lambda i: (0, 0)),             # b2 (resident)
        ],
        out_specs=pl.BlockSpec((tb, OUT_PAD), lambda i: (i, 0)),
        compiler_params=pltpu.CompilerParams(
            dimension_semantics=("parallel",)),
        cost_estimate=pl.CostEstimate(
            flops=flops, transcendentals=0, bytes_accessed=bytes_accessed),
    )(x_p, w1_p, b1_p, w2_p, b2_p)

    return out_padded[:batch, :OUT_FEATURES]


def init_params(key):
    """Deterministic parameter init matching nn.Linear shapes (synthetic)."""
    k1, k2, k3, k4 = jax.random.split(key, 4)
    # PyTorch-style uniform(-1/sqrt(fan_in), 1/sqrt(fan_in)); stored as (in, out).
    lim1 = 1.0 / jnp.sqrt(784.0)
    lim2 = 1.0 / jnp.sqrt(300.0)
    w1 = jax.random.uniform(k1, (784, 300), jnp.float32, -lim1, lim1)
    b1 = jax.random.uniform(k2, (300,), jnp.float32, -lim1, lim1)
    w2 = jax.random.uniform(k3, (300, 10), jnp.float32, -lim2, lim2)
    b2 = jax.random.uniform(k4, (10,), jnp.float32, -lim2, lim2)
    return w1, b1, w2, b2


if __name__ == "__main__":
    key = jax.random.PRNGKey(0)
    k_x, k_p = jax.random.split(key)

    # Small MNIST-like batch: (B, 1, 28, 28), NCHW.
    x = jax.random.normal(k_x, (2, 1, 28, 28), jnp.float32)
    w1, b1, w2, b2 = init_params(k_p)

    out = mlp_forward(x, w1, b1, w2, b2)
    out = jax.block_until_ready(out)

    # Cross-check against a pure-f32 JAX reference (eval-mode dropout == identity).
    # Tolerance is relaxed because the kernel uses bf16 inputs/weights with
    # f32 accumulation.
    ref = jnp.maximum(x.reshape(-1, 784) @ w1 + b1, 0.0) @ w2 + b2
    assert out.shape == (2, 10)
    assert jnp.allclose(out, ref, atol=5e-2, rtol=5e-2)

    print("KERNEL_OK")
</pallas_src>

<mosaic_0001>
module attributes {stable_mosaic.version = 11 : i64} {
  func.func @_mlp_kernel(%arg0: i32, %arg1: memref<128x784xbf16, #tpu.memory_space<vmem>>, %arg2: memref<784x384xbf16, #tpu.memory_space<vmem>>, %arg3: memref<1x384xf32, #tpu.memory_space<vmem>>, %arg4: memref<384x128xbf16, #tpu.memory_space<vmem>>, %arg5: memref<1x128xf32, #tpu.memory_space<vmem>>, %arg6: memref<128x128xf32, #tpu.memory_space<vmem>>) attributes {dimension_semantics = [#tpu.dimension_semantics<parallel>], iteration_bounds = array<i64: 1>, scalar_prefetch = 0 : i64, scratch_operands = 0 : i64, tpu.core_type = #tpu.core_type<tc>, window_params = [{transform_indices = @transform_0, window_bounds = array<i64: 128, 784>}, {pipeline_mode = #tpu.pipeline_mode<synchronous>, transform_indices = @transform_1, window_bounds = array<i64: 784, 384>}, {pipeline_mode = #tpu.pipeline_mode<synchronous>, transform_indices = @transform_2, window_bounds = array<i64: 1, 384>}, {pipeline_mode = #tpu.pipeline_mode<synchronous>, transform_indices = @transform_3, window_bounds = array<i64: 384, 128>}, {pipeline_mode = #tpu.pipeline_mode<synchronous>, transform_indices = @transform_4, window_bounds = array<i64: 1, 128>}, {transform_indices = @transform_5, window_bounds = array<i64: 128, 128>}]} {
    %c0 = arith.constant 0 : index
    %c0_0 = arith.constant 0 : index
    %0 = vector.load %arg1[%c0, %c0_0] : memref<128x784xbf16, #tpu.memory_space<vmem>>, vector<128x784xbf16>
    %c0_1 = arith.constant 0 : index
    %c0_2 = arith.constant 0 : index
    %1 = vector.load %arg2[%c0_1, %c0_2] : memref<784x384xbf16, #tpu.memory_space<vmem>>, vector<784x384xbf16>
    %cst = arith.constant dense<0.000000e+00> : vector<128x384xf32>
    %2 = tpu.matmul %0, %1, %cst {dimension_numbers = #tpu.dot_dimension_numbers<[1], [0], [0], [1], [0, 0, 1, 1], [], []>} : vector<128x784xbf16>, vector<784x384xbf16>, vector<128x384xf32> -> vector<128x384xf32>
    %c0_3 = arith.constant 0 : index
    %c0_4 = arith.constant 0 : index
    %3 = vector.load %arg3[%c0_3, %c0_4] : memref<1x384xf32, #tpu.memory_space<vmem>>, vector<1x384xf32>
    %4 = vector.broadcast %3 : vector<1x384xf32> to vector<128x384xf32>
    %5 = arith.addf %2, %4 : vector<128x384xf32>
    %cst_5 = arith.constant 0.000000e+00 : f32
    %6 = vector.broadcast %cst_5 : f32 to vector<128x384xf32>
    %7 = arith.maximumf %5, %6 : vector<128x384xf32>
    %8 = arith.truncf %7 : vector<128x384xf32> to vector<128x384xbf16>
    %c0_6 = arith.constant 0 : index
    %c0_7 = arith.constant 0 : index
    %9 = vector.load %arg4[%c0_6, %c0_7] : memref<384x128xbf16, #tpu.memory_space<vmem>>, vector<384x128xbf16>
    %cst_8 = arith.constant dense<0.000000e+00> : vector<128x128xf32>
    %10 = tpu.matmul %8, %9, %cst_8 {dimension_numbers = #tpu.dot_dimension_numbers<[1], [0], [0], [1], [0, 0, 1, 1], [], []>} : vector<128x384xbf16>, vector<384x128xbf16>, vector<128x128xf32> -> vector<128x128xf32>
    %c0_9 = arith.constant 0 : index
    %c0_10 = arith.constant 0 : index
    %11 = vector.load %arg5[%c0_9, %c0_10] : memref<1x128xf32, #tpu.memory_space<vmem>>, vector<1x128xf32>
    %12 = vector.broadcast %11 : vector<1x128xf32> to vector<128x128xf32>
    %13 = arith.addf %10, %12 : vector<128x128xf32>
    %c0_11 = arith.constant 0 : index
    %c0_12 = arith.constant 0 : index
    %14 = vector.load %arg6[%c0_11, %c0_12] : memref<128x128xf32, #tpu.memory_space<vmem>>, vector<128x128xf32>
    tpu.vector_store %arg6[%c0_11, %c0_12], %13 {strides = array<i32>} : memref<128x128xf32, #tpu.memory_space<vmem>>, vector<128x128xf32>,
    return
  }
  func.func @transform_0(%arg0: i32) -> (i32, i32) {
    %c0_i32 = arith.constant 0 : i32
    %c0_i32_0 = arith.constant 0 : i32
    return %arg0, %c0_i32 : i32, i32
  }
  func.func @transform_1(%arg0: i32) -> (i32, i32) {
    %c0_i32 = arith.constant 0 : i32
    %c0_i32_0 = arith.constant 0 : i32
    %c0_i32_1 = arith.constant 0 : i32
    return %c0_i32, %c0_i32_0 : i32, i32
  }
  func.func @transform_2(%arg0: i32) -> (i32, i32) {
    %c0_i32 = arith.constant 0 : i32
    %c0_i32_0 = arith.constant 0 : i32
    %c0_i32_1 = arith.constant 0 : i32
    return %c0_i32, %c0_i32_0 : i32, i32
  }
  func.func @transform_3(%arg0: i32) -> (i32, i32) {
    %c0_i32 = arith.constant 0 : i32
    %c0_i32_0 = arith.constant 0 : i32
    %c0_i32_1 = arith.constant 0 : i32
    return %c0_i32, %c0_i32_0 : i32, i32
  }
  func.func @transform_4(%arg0: i32) -> (i32, i32) {
    %c0_i32 = arith.constant 0 : i32
    %c0_i32_0 = arith.constant 0 : i32
    %c0_i32_1 = arith.constant 0 : i32
    return %c0_i32, %c0_i32_0 : i32, i32
  }
  func.func @transform_5(%arg0: i32) -> (i32, i32) {
    %c0_i32 = arith.constant 0 : i32
    %c0_i32_0 = arith.constant 0 : i32
    return %arg0, %c0_i32 : i32, i32
  }
}

</mosaic_0001>

<bundles_post_ra>
// kernel: mlp_forward.1
= control target key start
LH: loop header
LB: loop body
LE: loop exit
PB: predicated region body
PF: predicated region fallthrough
CT: control target
= control target key end

     0   :  { %v3724_v1 = vmov 0   ;;  %vm1362_vm0 = vcmask 130048   ;;  %s4950_s1 = inlined_call_operand.vmem [shape: bf16[784,384], index: 1, kind: input, shape index: {}]   ;;  %s4951_s0 = inlined_call_operand.vmem [shape: bf16[128,784], index: 0, kind: input, shape index: {}]   ;;  %s4952_s3 = inlined_call_operand.vmem [shape: bf16[384,128], index: 3, kind: input, shape index: {}]   ;;  %s4953_s2 = inlined_call_operand.vmem [shape: f32[1,384], index: 2, kind: input, shape index: {}]   ;;  %s4954_s4 = inlined_call_operand.vmem [shape: f32[1,128], index: 4, kind: input, shape index: {}]   ;;  %s4955_s5 = inlined_call_operand.vmem [shape: f32[128,128], index: 5, kind: output, shape index: {}]  }
   0x1   :  { %v3418_v0 = vld [vmem:[%s4950_s1 + $0x4] ss:$12 sps:$4 sm:$0xff]   ;;  %1798 = vmatprep.mubr.bf16.mxu1 %v3724_v1  ;;  %v3422_v3 = vld [vmem:[%s4950_s1] ss:$12 sps:$4 sm:$0xff]   ;;  %v3424_v5 = vld [vmem:[%s4950_s1 + $0x1c] ss:$12 sps:$4 sm:$0xff]  }
   0x2   :  { %v3420_v2 = vld [vmem:[%s4950_s1 + $0x484] ss:$12 sps:$4 sm:$0xff]   ;;  %1387 = vmatprep.subr.bf16.mxu0 %v3418_v0  ;;  %v3423_v4 = vld [vmem:[%s4950_s1 + $0x480] ss:$12 sps:$4 sm:$0xff]   ;;  %v3426_v6 = vld [vmem:[%s4951_s0 + $0xf8] ss:$28 sps:$4 sm:$0xff]  }
   0x3   :  { %3287 = vmatprep.subr.bf16.mxu1 %v3420_v2  ;;  %1388 = vmatpush1.bf16.msra.mxu0 %v3422_v3  ;;  %v3427_v7 = vld [vmem:[%s4950_s1 + $0xc8] ss:$12 sps:$4 sm:$0xff]   ;;  %v3428_v8 = vld [vmem:[%s4950_s1 + $0x18] ss:$12 sps:$4 sm:$0xff]   ;;  %v3432_v11 = vld [vmem:[%s4950_s1 + $0xe0] ss:$12 sps:$4 sm:$0xff]  }
   0x4   :  { %3288 = vmatpush1.bf16.msra.mxu1 %v3423_v4  ;;  %1389 = vmatprep.subr.bf16.mxu0 %v3424_v5  ;;  %v3429_v9 = vld [vmem:[%s4950_s1 + $0x8] ss:$12 sps:$4 sm:$0xff]   ;;  %v3433_v12 = vld [vmem:[%s4950_s1 + $0x30] ss:$12 sps:$4 sm:$0xff]   ;;  %v3434_v13 = vld [vmem:[%s4950_s1 + $0x20] ss:$12 sps:$4 sm:$0xff]  }
   0x5   :  { %2956 = vmatprep.subr.bf16.mxu1 %v3427_v7  ;;  %v3430_v10 = vld [vmem:[%s4950_s1 + $0x34] ss:$12 sps:$4 sm:$0xff]   ;;  %v3435_v14 = vld [vmem:[%s4950_s1 + $0x4c] ss:$12 sps:$4 sm:$0xff]   ;;  %v3441_v19 = vld [vmem:[%s4950_s1 + $0x64] ss:$12 sps:$4 sm:$0xff]  }
   0x6   :  { %v3437_v15 = vld [vmem:[%s4951_s0 + $0x130] ss:$28 sps:$4 sm:$0xff]   ;;  %v3438_v16 = vld [vmem:[%s4950_s1 + $0xf8] ss:$12 sps:$4 sm:$0xff]   ;;  %v3439_v17 = vld [vmem:[%s4950_s1 + $0x48] ss:$12 sps:$4 sm:$0xff]  }
   0x7   :  { %2919 = vmatmul.mubr.msk.bf16.vlgmr.msra.gmra.mrb[0].mxu1 %vm1362_vm0, %v3426_v6  ;;  %1390 = vmatpush1.bf16.msra.mxu0 %v3428_v8  ;;  %v3440_v18 = vld [vmem:[%s4950_s1 + $0x38] ss:$12 sps:$4 sm:$0xff]   ;;  %v3443_v20 = vld [vmem:[%s4950_s1 + $0x110] ss:$12 sps:$4 sm:$0xff]   ;;  %v3444_v21 = vld [vmem:[%s4950_s1 + $0x60] ss:$12 sps:$4 sm:$0xff]  }
   0x8   :  { %2957 = vmatpush3.bf16.msra.mxu1 %v3429_v9  ;;  %1391 = vmatprep.subr.bf16.mxu0 %v3430_v10  ;;  %v3445_v22 = vld [vmem:[%s4950_s1 + $0x50] ss:$12 sps:$4 sm:$0xff]   ;;  %v3448_v24 = vld [vmem:[%s4951_s0 + $0x168] ss:$28 sps:$4 sm:$0xff]   ;;  %v3452_v28 = vld [vmem:[%s4950_s1 + $0x94] ss:$12 sps:$4 sm:$0xff]  }
   0x9   :  { %1808 = vmatprep.mubr.bf16.mxu1 %v3724_v1  ;;  %2958 = vmatprep.subr.bf16.mxu1 %v3432_v11  ;;  %v3446_v23 = vld [vmem:[%s4950_s1 + $0x7c] ss:$12 sps:$4 sm:$0xff]   ;;  %v3450_v26 = vld [vmem:[%s4950_s1 + $0x78] ss:$12 sps:$4 sm:$0xff]   ;;  %v3454_v29 = vld [vmem:[%s4950_s1 + $0x140] ss:$12 sps:$4 sm:$0xff]  }
   0xa   :  { %v3449_v25 = vld [vmem:[%s4950_s1 + $0x128] ss:$12 sps:$4 sm:$0xff]   ;;  %v3455_v30 = vld [vmem:[%s4950_s1 + $0x90] ss:$12 sps:$4 sm:$0xff]   ;;  %v3456_v31 = vld [vmem:[%s4950_s1 + $0x80] ss:$12 sps:$4 sm:$0xff]  }
   0xb   :  { %1392 = vmatpush1.bf16.msra.mxu0 %v3433_v12  ;;  %v3451_v27 = vld [vmem:[%s4950_s1 + $0x68] ss:$12 sps:$4 sm:$0xff]   ;;  %v3457_v32 = vld [vmem:[%s4950_s1 + $0xac] ss:$12 sps:$4 sm:$0xff]   ;;  %v3459_v33 = vld [vmem:[%s4951_s0 + $0x1a0] ss:$28 sps:$4 sm:$0xff]  }
   0xc   :  { %2959 = vmatpush3.bf16.msra.mxu1 %v3434_v13  ;;  %1393 = vmatprep.subr.bf16.mxu0 %v3435_v14  ;;  %v3460_v34 = vld [vmem:[%s4950_s1 + $0x158] ss:$12 sps:$4 sm:$0xff]   ;;  %v3461_v35 = vld [vmem:[%s4950_s1 + $0xa8] ss:$12 sps:$4 sm:$0xff]   ;;  %v3465_v38 = vld [vmem:[%s4950_s1 + $0x170] ss:$12 sps:$4 sm:$0xff]  }
   0xd   :  { %2960 = vmatprep.subr.bf16.mxu1 %v3438_v16  ;;  %v3462_v36 = vld [vmem:[%s4950_s1 + $0x98] ss:$12 sps:$4 sm:$0xff]   ;;  %v3466_v39 = vld [vmem:[%s4950_s1 + $0xc0] ss:$12 sps:$4 sm:$0xff]   ;;  %v3467_v40 = vld [vmem:[%s4950_s1 + $0xb0] ss:$12 sps:$4 sm:$0xff]  }
   0xe   :  { %v3463_v37 = vld [vmem:[%s4950_s1 + $0xc4] ss:$12 sps:$4 sm:$0xff]   ;;  %v3889_v42 = vld [vmem:[%s4951_s0] ss:$28 sps:$4 sm:$0xff]   ;;  %v3479_v48 = vld [vmem:[%s4950_s1 + $0x10c] ss:$12 sps:$4 sm:$0xff]  }
   0xf   :  { %2920 = vmatmul.mubr.msk.bf16.gmra.mrb[4].mxu1 %vm1362_vm0, %v3437_v15  ;;  %1394 = vmatpush1.bf16.msra.mxu0 %v3439_v17  ;;  %v3470_v41 = vld [vmem:[%s4951_s0 + $0x4] ss:$28 sps:$4 sm:$0xff]   ;;  %v3471_v43 = vld [vmem:[%s4950_s1 + $0xdc] ss:$12 sps:$4 sm:$0xff]   ;;  %v3916_v49 = vld [vmem:[%s4951_s0 + $0x38] ss:$28 sps:$4 sm:$0xff]  }
  0x10   :  { %2961 = vmatpush3.bf16.msra.mxu1 %v3440_v18  ;;  %1395 = vmatprep.subr.bf16.mxu0 %v3441_v19  ;;  %v3473_v44 = vld [vmem:[%s4950_s1 + $0xd8] ss:$12 sps:$4 sm:$0xff]   ;;  %v3474_v45 = vld [vmem:[%s4950_s1 + $0xf4] ss:$12 sps:$4 sm:$0xff]   ;;  %v3476_v47 = vld [vmem:[%s4950_s1 + $0xf0] ss:$12 sps:$4 sm:$0xff]  }
  0x11   :  { %1818 = vmatprep.mubr.bf16.mxu1 %v3724_v1  ;;  %2962 = vmatprep.subr.bf16.mxu1 %v3443_v20  ;;  %v3903_v46 = vld [vmem:[%s4951_s0 + $0x3c] ss:$28 sps:$4 sm:$0xff]   ;;  %v3482_v50 = vld [vmem:[%s4950_s1 + $0x108] ss:$12 sps:$4 sm:$0xff]   ;;  %v3483_v52 = vld [vmem:[%s4950_s1 + $0x124] ss:$12 sps:$4 sm:$0xff]  }
  0x12   :  { %1419 = vmatprep.mubr.bf16.mxu0 %v3470_v41  ;;  %v3924_v51 = vld [vmem:[%s4951_s0 + $0x74] ss:$28 sps:$4 sm:$0xff]   ;;  %v3485_v53 = vld [vmem:[%s4950_s1 + $0x120] ss:$12 sps:$4 sm:$0xff]   ;;  %v3488_v54 = vld [vmem:[%s4950_s1 + $0x13c] ss:$12 sps:$4 sm:$0xff]  }
  0x13   :  { %1396 = vmatpush1.bf16.msra.mxu0 %v3444_v21  ;;  %v3940_v55 = vld [vmem:[%s4951_s0 + $0x70] ss:$28 sps:$4 sm:$0xff]   ;;  %v3491_v56 = vld [vmem:[%s4950_s1 + $0x138] ss:$12 sps:$4 sm:$0xff]   ;;  %v3492_v57 = vld [vmem:[%s4950_s1 + $0x154] ss:$12 sps:$4 sm:$0xff]  }
  0x14   :  { %2963 = vmatpush3.bf16.msra.mxu1 %v3445_v22  ;;  %1397 = vmatprep.subr.bf16.mxu0 %v3446_v23  ;;  %v3951_v58 = vld [vmem:[%s4951_s0 + $0xac] ss:$28 sps:$4 sm:$0xff]   ;;  %v3494_v61 = vld [vmem:[%s4950_s1 + $0x150] ss:$12 sps:$4 sm:$0xff]   ;;  %v3987_v5 = vld [vmem:[%s4951_s0 + $0xe4] ss:$28 sps:$4 sm:$0xff]  }
  0x15   :  { %2964 = vmatprep.subr.bf16.mxu1 %v3449_v25  ;;  %v3510_v59 = vld [vmem:[%s4950_s1 + $0x248] ss:$12 sps:$4 sm:$0xff]   ;;  %v3497_v62 = vld [vmem:[%s4950_s1 + $0x16c] ss:$12 sps:$4 sm:$0xff]   ;;  %v3503_v4 = vld [vmem:[%s4950_s1 + $0x184] ss:$12 sps:$4 sm:$0xff]  }
  0x16   :  { %v3511_v60 = vld [vmem:[%s4950_s1 + $0x188] ss:$12 sps:$4 sm:$0xff]   ;;  %v3515_v63 = vld [vmem:[%s4950_s1 + $0x260] ss:$12 sps:$4 sm:$0xff]   ;;  %v3523_v6 = vld [vmem:[%s4950_s1 + $0x278] ss:$12 sps:$4 sm:$0xff]  }
  0x17   :  { %2921 = vmatmul.mubr.msk.bf16.gmra.mrb[8].mxu1 %vm1362_vm0, %v3448_v24  ;;  %1398 = vmatpush1.bf16.msra.mxu0 %v3450_v26  ;;  %v3516_v0 = vld [vmem:[%s4950_s1 + $0x1a0] ss:$12 sps:$4 sm:$0xff]   ;;  %v3976_v2 = vld [vmem:[%s4951_s0 + $0xa8] ss:$28 sps:$4 sm:$0xff]   ;;  %v3528_v10 = vld [vmem:[%s4950_s1 + $0x290] ss:$12 sps:$4 sm:$0xff]  }
  0x18   :  { %2965 = vmatpush3.bf16.msra.mxu1 %v3451_v27  ;;  %1399 = vmatprep.subr.bf16.mxu0 %v3452_v28  ;;  %v3500_v3 = vld [vmem:[%s4950_s1 + $0x168] ss:$12 sps:$4 sm:$0xff]   ;;  %v3524_v7 = vld [vmem:[%s4950_s1 + $0x1b8] ss:$12 sps:$4 sm:$0xff]   ;;  %v3501_v8 = vld [vmem:[%s4950_s1 + $0x180] ss:$12 sps:$4 sm:$0xff]  }
  0x19   :  { %1828 = vmatprep.mubr.bf16.mxu1 %v3724_v1  ;;  %2966 = vmatprep.subr.bf16.mxu1 %v3454_v29  ;;  %v3508_v9 = vld [vmem:[%s4950_s1 + $0x19c] ss:$12 sps:$4 sm:$0xff]   ;;  %v3506_v12 = vld [vmem:[%s4950_s1 + $0x198] ss:$12 sps:$4 sm:$0xff]   ;;  %v3514_v14 = vld [vmem:[%s4950_s1 + $0x1b4] ss:$12 sps:$4 sm:$0xff]  }
  0x1a   :  { %v3529_v11 = vld [vmem:[%s4950_s1 + $0x1d0] ss:$12 sps:$4 sm:$0xff]   ;;  %v3536_v16 = vld [vmem:[%s4950_s1 + $0x2a8] ss:$12 sps:$4 sm:$0xff]   ;;  %v3521_v19 = vld [vmem:[%s4950_s1 + $0x1cc] ss:$12 sps:$4 sm:$0xff]  }
  0x1b   :  { %1400 = vmatpush1.bf16.msra.mxu0 %v3455_v30  ;;  %v4016_v13 = vld [vmem:[%s4951_s0 + $0xe0] ss:$28 sps:$4 sm:$0xff]   ;;  %v3537_v17 = vld [vmem:[%s4950_s1 + $0x1e8] ss:$12 sps:$4 sm:$0xff]   ;;  %v3527_v24 = vld [vmem:[%s4950_s1 + $0x1e4] ss:$12 sps:$4 sm:$0xff]  }
  0x1c   :  { %2967 = vmatpush3.bf16.msra.mxu1 %v3456_v31  ;;  %1401 = vmatprep.subr.bf16.mxu0 %v3457_v32  ;;  %v4024_v15 = vld [vmem:[%s4951_s0 + $0x11c] ss:$28 sps:$4 sm:$0xff]   ;;  %v3541_v20 = vld [vmem:[%s4950_s1 + $0x2c0] ss:$12 sps:$4 sm:$0xff]   ;;  %v3519_v22 = vld [vmem:[%s4950_s1 + $0x1c8] ss:$12 sps:$4 sm:$0xff]  }
  0x1d   :  { %2968 = vmatprep.subr.bf16.mxu1 %v3460_v34  ;;  %v3512_v18 = vld [vmem:[%s4950_s1 + $0x1b0] ss:$12 sps:$4 sm:$0xff]   ;;  %v3542_v21 = vld [vmem:[%s4950_s1 + $0x200] ss:$12 sps:$4 sm:$0xff]   ;;  %v4054_v23 = vld [vmem:[%s4951_s0 + $0x118] ss:$28 sps:$4 sm:$0xff]  }
  0x1e   :  { %v4062_v25 = vld [vmem:[%s4951_s0 + $0x154] ss:$28 sps:$4 sm:$0xff]   ;;  %v3549_v26 = vld [vmem:[%s4950_s1 + $0x2d8] ss:$12 sps:$4 sm:$0xff]   ;;  %v3525_v28 = vld [vmem:[%s4950_s1 + $0x1e0] ss:$12 sps:$4 sm:$0xff]  }
  0x1f   :  { %2922 = vmatmul.mubr.msk.bf16.gmra.mrb[12].mxu1 %vm1362_vm0, %v3459_v33  ;;  %1402 = vmatpush1.bf16.msra.mxu0 %v3461_v35  ;;  %v3550_v27 = vld [vmem:[%s4950_s1 + $0x218] ss:$12 sps:$4 sm:$0xff]   ;;  %v3534_v29 = vld [vmem:[%s4950_s1 + $0x1fc] ss:$12 sps:$4 sm:$0xff]   ;;  %v4092_v33 = vld [vmem:[%s4951_s0 + $0x150] ss:$28 sps:$4 sm:$0xff]  }
  0x20   :  { %2969 = vmatpush3.bf16.msra.mxu1 %v3462_v36  ;;  %1403 = vmatprep.subr.bf16.mxu0 %v3463_v37  ;;  %v3554_v30 = vld [vmem:[%s4950_s1 + $0x2f0] ss:$12 sps:$4 sm:$0xff]   ;;  %v3532_v32 = vld [vmem:[%s4950_s1 + $0x1f8] ss:$12 sps:$4 sm:$0xff]   ;;  %v4098_v34 = vld [vmem:[%s4951_s0 + $0x18c] ss:$28 sps:$4 sm:$0xff]  }
  0x21   :  { %2970 = vmatprep.subr.bf16.mxu1 %v3465_v38  ;;  %1871 = vmatprep.mubr.bf16.mxu1 %v3470_v41  ;;  %v3555_v31 = vld [vmem:[%s4950_s1 + $0x230] ss:$12 sps:$4 sm:$0xff]   ;;  %v3540_v35 = vld [vmem:[%s4950_s1 + $0x214] ss:$12 sps:$4 sm:$0xff]   ;;  %v3547_v37 = vld [vmem:[%s4950_s1 + $0x22c] ss:$12 sps:$4 sm:$0xff]  }
  0x22   :  { %v3538_v36 = vld [vmem:[%s4950_s1 + $0x210] ss:$12 sps:$4 sm:$0xff]   ;;  %v3545_v38 = vld [vmem:[%s4950_s1 + $0x228] ss:$12 sps:$4 sm:$0xff]  }
  0x23   :  { %1404 = vmatpush1.bf16.msra.mxu0 %v3466_v39  ;;  %v4118_v39 = vld [vmem:[%s4951_s0 + $0x188] ss:$28 sps:$4 sm:$0xff]  }
  0x24   :  { %2971 = vmatpush3.bf16.msra.mxu1 %v3467_v40  ;;  %1405 = vmatprep.subr.bf16.mxu0 %v3471_v43  ;;  %v4124_v40 = vld [vmem:[%s4951_s0 + $0xc] ss:$28 sps:$4 sm:$0xff]   ;;  %v3553_v41 = vld [vmem:[%s4950_s1 + $0x244] ss:$12 sps:$4 sm:$0xff]  }
  0x25   :  { %3020 = vmatprep.subr.bf16.mxu1 %v3510_v59  ;;  %v3561_v43 = vld [vmem:[%s4950_s1 + $0x25c] ss:$12 sps:$4 sm:$0xff]   ;;  %v3612_v59 = vld [vmem:[%s4950_s1 + $0x338] ss:$12 sps:$4 sm:$0xff]  }
  0x27   :  { %1872 = vmatmul.mubr.bf16.vlgmr.msra.gmra.mrb[16].mxu1 %v3889_v42  ;;  %1406 = vmatpush1.bf16.msra.mxu0 %v3473_v44  ;;  %v4140_v44 = vld [vmem:[%s4951_s0 + $0x8] ss:$28 sps:$4 sm:$0xff]  }
  0x28   :  { %1879 = vmatprep.mubr.bf16.mxu1 %v3903_v46  ;;  %1407 = vmatprep.subr.bf16.mxu0 %v3474_v45  ;;  %v3559_v45 = vld [vmem:[%s4950_s1 + $0x258] ss:$12 sps:$4 sm:$0xff]  }
  0x29   :  { %3021 = vmatpush3.bf16.msra.mxu1 %v3511_v60  ;;  %v3571_v60 = vld [vmem:[%s4950_s1 + $0x2a0] ss:$12 sps:$4 sm:$0xff]  }
  0x2a   :  { %3022 = vmatprep.subr.bf16.mxu1 %v3515_v63  ;;  %v3617_v63 = vld [vmem:[%s4950_s1 + $0x350] ss:$12 sps:$4 sm:$0xff]  }
  0x2b   :  { %1408 = vmatpush1.bf16.msra.mxu0 %v3476_v47  ;;  %v4152_v47 = vld [vmem:[%s4951_s0 + $0x44] ss:$28 sps:$4 sm:$0xff]  }
  0x2c   :  { %1409 = vmatprep.subr.bf16.mxu0 %v3479_v48  ;;  %v3598_v48 = vld [vmem:[%s4950_s1 + $0x3c8] ss:$12 sps:$4 sm:$0xff]  }
  0x2d   :  { %3023 = vmatpush3.bf16.msra.mxu1 %v3516_v0  ;;  %v3576_v0 = vld [vmem:[%s4950_s1 + $0x2b8] ss:$12 sps:$4 sm:$0xff]  }
  0x2e   :  { %3024 = vmatprep.subr.bf16.mxu1 %v3523_v6  ;;  %v3625_v6 = vld [vmem:[%s4950_s1 + $0x368] ss:$12 sps:$4 sm:$0xff]  }
  0x2f   :  { %1880 = vmatmul.mubr.bf16.gmra.mrb[20].mxu1 %v3916_v49  ;;  %1410 = vmatpush1.bf16.msra.mxu0 %v3482_v50  ;;  %v3562_v50 = vld [vmem:[%s4950_s1 + $0x270] ss:$12 sps:$4 sm:$0xff]  }
  0x30   :  { %1887 = vmatprep.mubr.bf16.mxu1 %v3924_v51  ;;  %1411 = vmatprep.subr.bf16.mxu0 %v3483_v52  ;;  %v3603_v52 = vld [vmem:[%s4950_s1 + $0x3e0] ss:$12 sps:$4 sm:$0xff]  }
  0x31   :  { %3025 = vmatpush3.bf16.msra.mxu1 %v3524_v7  ;;  %v3580_v7 = vld [vmem:[%s4950_s1 + $0x2d0] ss:$12 sps:$4 sm:$0xff]  }
  0x32   :  { %3026 = vmatprep.subr.bf16.mxu1 %v3528_v10  ;;  %v3630_v10 = vld [vmem:[%s4950_s1 + $0x380] ss:$12 sps:$4 sm:$0xff]  }
  0x33   :  { %1412 = vmatpush1.bf16.msra.mxu0 %v3485_v53  ;;  %v3604_v53 = vld [vmem:[%s4950_s1 + $0x320] ss:$12 sps:$4 sm:$0xff]  }
  0x34   :  { %1413 = vmatprep.subr.bf16.mxu0 %v3488_v54  ;;  %v3567_v54 = vld [vmem:[%s4950_s1 + $0x288] ss:$12 sps:$4 sm:$0xff]  }
  0x35   :  { %3027 = vmatpush3.bf16.msra.mxu1 %v3529_v11  ;;  %v3585_v11 = vld [vmem:[%s4950_s1 + $0x2e8] ss:$12 sps:$4 sm:$0xff]  }
  0x36   :  { %3028 = vmatprep.subr.bf16.mxu1 %v3536_v16  ;;  %v3638_v16 = vld [vmem:[%s4950_s1 + $0x398] ss:$12 sps:$4 sm:$0xff]  }
  0x37   :  { %1888 = vmatmul.mubr.bf16.gmra.mrb[24].mxu1 %v3940_v55  ;;  %1414 = vmatpush1.bf16.msra.mxu0 %v3491_v56  ;;  %v3573_v56 = vld [vmem:[%s4950_s1 + $0x2a4] ss:$12 sps:$4 sm:$0xff]  }
  0x38   :  { %1895 = vmatprep.mubr.bf16.mxu1 %v3951_v58  ;;  %1415 = vmatprep.subr.bf16.mxu0 %v3492_v57  ;;  %v4190_v57 = vld [vmem:[%s4951_s0 + $0x7c] ss:$28 sps:$4 sm:$0xff]  }
  0x39   :  { %3029 = vmatpush3.bf16.msra.mxu1 %v3537_v17  ;;  %v3589_v17 = vld [vmem:[%s4950_s1 + $0x300] ss:$12 sps:$4 sm:$0xff]  }
  0x3a   :  { %3030 = vmatprep.subr.bf16.mxu1 %v3541_v20  ;;  %v3643_v20 = vld [vmem:[%s4950_s1 + $0x3b0] ss:$12 sps:$4 sm:$0xff]  }
  0x3b   :  { %1416 = vmatpush1.bf16.msra.mxu0 %v3494_v61  ;;  %v3578_v61 = vld [vmem:[%s4950_s1 + $0x2bc] ss:$12 sps:$4 sm:$0xff]  }
  0x3c   :  { %1417 = vmatprep.subr.bf16.mxu0 %v3497_v62  ;;  %v3616_v62 = vld [vmem:[%s4950_s1 + $0x410] ss:$12 sps:$4 sm:$0xff]  }
  0x3d   :  { %3031 = vmatpush3.bf16.msra.mxu1 %v3542_v21  ;;  %v3594_v21 = vld [vmem:[%s4950_s1 + $0x318] ss:$12 sps:$4 sm:$0xff]  }
  0x3e   :  { %3032 = vmatprep.subr.bf16.mxu1 %v3549_v26  ;;  %v3609_v26 = vld [vmem:[%s4950_s1 + $0x34c] ss:$12 sps:$4 sm:$0xff]  }
  0x3f   :  { %1896 = vmatmul.mubr.bf16.gmra.mrb[28].mxu1 %v3976_v2  ;;  %1418 = vmatpush1.bf16.msra.mxu0 %v3500_v3  ;;  %v3582_v3 = vld [vmem:[%s4950_s1 + $0x2d4] ss:$12 sps:$4 sm:$0xff]  }
  0x40   :  { %1903 = vmatprep.mubr.bf16.mxu1 %v3987_v5  ;;  %1500 = vmatprep.subr.bf16.mxu0 %v3503_v4  ;;  %v4228_v4 = vld [vmem:[%s4951_s0 + $0xb4] ss:$28 sps:$4 sm:$0xff]  }
  0x41   :  { %3033 = vmatpush3.bf16.msra.mxu1 %v3550_v27  ;;  %v3607_v27 = vld [vmem:[%s4950_s1 + $0x348] ss:$12 sps:$4 sm:$0xff]  }
  0x42   :  { %1420 = vmatmul.mubr.bf16.vlgmr.msra.gmra.mrb[0].mxu0 %v3889_v42  ;;  %3034 = vmatprep.subr.bf16.mxu1 %v3554_v30  ;;  %v3551_v42 = vld [vmem:[%s4950_s1 + $0x240] ss:$12 sps:$4 sm:$0xff]   ;;  %v3615_v30 = vld [vmem:[%s4950_s1 + $0x364] ss:$12 sps:$4 sm:$0xff]  }
  0x43   :  { %1501 = vmatpush1.bf16.msra.mxu0 %v3501_v8  ;;  %1429 = vmatprep.mubr.bf16.mxu0 %v3903_v46  ;;  %v3564_v46 = vld [vmem:[%s4950_s1 + $0x274] ss:$12 sps:$4 sm:$0xff]   ;;  %v3587_v8 = vld [vmem:[%s4950_s1 + $0x2ec] ss:$12 sps:$4 sm:$0xff]  }
  0x44   :  { %1502 = vmatprep.subr.bf16.mxu0 %v3508_v9  ;;  %v3629_v9 = vld [vmem:[%s4950_s1 + $0x440] ss:$12 sps:$4 sm:$0xff]  }
  0x45   :  { %3035 = vmatpush3.bf16.msra.mxu1 %v3555_v31  ;;  %v3613_v31 = vld [vmem:[%s4950_s1 + $0x360] ss:$12 sps:$4 sm:$0xff]  }
  0x46   :  { %3084 = vmatprep.subr.bf16.mxu1 %v3598_v48  ;;  %v3653_v48 = vld [vmem:[%s4951_s0 + $0x4c] ss:$28 sps:$4 sm:$0xff]  }
  0x47   :  { %1904 = vmatmul.mubr.bf16.gmra.mrb[32].mxu1 %v4016_v13  ;;  %1503 = vmatpush1.bf16.msra.mxu0 %v3506_v12  ;;  %v4258_v12 = vld [vmem:[%s4951_s0 + $0xb0] ss:$28 sps:$4 sm:$0xff]  }
  0x48   :  { %1911 = vmatprep.mubr.bf16.mxu1 %v4024_v15  ;;  %1504 = vmatprep.subr.bf16.mxu0 %v3514_v14  ;;  %v4266_v14 = vld [vmem:[%s4951_s0 + $0xec] ss:$28 sps:$4 sm:$0xff]  }
  0x4a   :  { %1430 = vmatmul.mubr.bf16.gmra.mrb[4].mxu0 %v3916_v49  ;;  %v3599_v49 = vld [vmem:[%s4950_s1 + $0x308] ss:$12 sps:$4 sm:$0xff]  }
  0x4b   :  { %1505 = vmatpush1.bf16.msra.mxu0 %v3512_v18  ;;  %1439 = vmatprep.mubr.bf16.mxu0 %v3924_v51  ;;  %v3569_v51 = vld [vmem:[%s4950_s1 + $0x28c] ss:$12 sps:$4 sm:$0xff]   ;;  %v3596_v18 = vld [vmem:[%s4950_s1 + $0x31c] ss:$12 sps:$4 sm:$0xff]  }
  0x4c   :  { %1506 = vmatprep.subr.bf16.mxu0 %v3521_v19  ;;  %v3642_v19 = vld [vmem:[%s4950_s1 + $0x470] ss:$12 sps:$4 sm:$0xff]  }
  0x4f   :  { %1912 = vmatmul.mubr.bf16.gmra.mrb[36].mxu1 %v4054_v23  ;;  %1507 = vmatpush1.bf16.msra.mxu0 %v3519_v22  ;;  %v3597_v22 = vld [vmem:[%s4951_s0 + $0xe8] ss:$28 sps:$4 sm:$0xff]  }
  0x50   :  { %1919 = vmatprep.mubr.bf16.mxu1 %v4062_v25  ;;  %1508 = vmatprep.subr.bf16.mxu0 %v3527_v24  ;;  %v3602_v24 = vld [vmem:[%s4950_s1 + $0x334] ss:$12 sps:$4 sm:$0xff]  }
  0x52   :  { %1440 = vmatmul.mubr.bf16.gmra.mrb[8].mxu0 %v3940_v55  ;;  %v4182_v55 = vld [vmem:[%s4951_s0 + $0x40] ss:$28 sps:$4 sm:$0xff]  }
  0x53   :  { %1509 = vmatpush1.bf16.msra.mxu0 %v3525_v28  ;;  %1449 = vmatprep.mubr.bf16.mxu0 %v3951_v58  ;;  %v3611_v58 = vld [vmem:[%s4950_s1 + $0x3f8] ss:$12 sps:$4 sm:$0xff]   ;;  %v3610_v28 = vld [vmem:[%s4951_s0 + $0x120] ss:$28 sps:$4 sm:$0xff]  }
  0x54   :  { %1510 = vmatprep.subr.bf16.mxu0 %v3534_v29  ;;  %v3618_v29 = vld [vmem:[%s4951_s0 + $0x15c] ss:$28 sps:$4 sm:$0xff]  }
  0x57   :  { %1920 = vmatmul.mubr.bf16.gmra.mrb[40].mxu1 %v4092_v33  ;;  %1511 = vmatpush1.bf16.msra.mxu0 %v3532_v32  ;;  %v3622_v32 = vld [vmem:[%s4950_s1 + $0x37c] ss:$12 sps:$4 sm:$0xff]  }
  0x58   :  { %1927 = vmatprep.mubr.bf16.mxu1 %v4098_v34  ;;  %1512 = vmatprep.subr.bf16.mxu0 %v3540_v35  ;;  %v3631_v35 = vld [vmem:[%s4951_s0 + $0x194] ss:$28 sps:$4 sm:$0xff]  }
  0x5a   :  { %1450 = vmatmul.mubr.bf16.gmra.mrb[12].mxu0 %v3976_v2  ;;  %v4220_v2 = vld [vmem:[%s4951_s0 + $0x78] ss:$28 sps:$4 sm:$0xff]  }
  0x5b   :  { %1513 = vmatpush1.bf16.msra.mxu0 %v3538_v36  ;;  %1459 = vmatprep.mubr.bf16.mxu0 %v3987_v5  ;;  %v3624_v5 = vld [vmem:[%s4950_s1 + $0x428] ss:$12 sps:$4 sm:$0xff]  }
  0x5c   :  { %1514 = vmatprep.subr.bf16.mxu0 %v3547_v37  ;;  %v3628_v36 = vld [vmem:[%s4950_s1 + $0x394] ss:$12 sps:$4 sm:$0xff]  }
  0x5d   :  { %v3689_v37 = vld [vmem:[%s4950_s1 + $0x488] ss:$12 sps:$4 sm:$0xff]  }
  0x5f   :  { %1928 = vmatmul.mubr.bf16.gmra.mrb[44].mxu1 %v4118_v39  ;;  %1515 = vmatpush1.bf16.msra.mxu0 %v3545_v38  ;;  %v3626_v38 = vld [vmem:[%s4950_s1 + $0x390] ss:$12 sps:$4 sm:$0xff]  }
  0x60   :  { %1968 = vmatprep.mubr.bf16.mxu1 %v4124_v40  ;;  %1516 = vmatprep.subr.bf16.mxu0 %v3553_v41  ;;  %v3633_v41 = vld [vmem:[%s4950_s1 + $0x3a8] ss:$12 sps:$4 sm:$0xff]  }
  0x62   :  { %1460 = vmatmul.mubr.bf16.gmra.mrb[16].mxu0 %v4016_v13  ;;  %v3591_v13 = vld [vmem:[%s4950_s1 + $0x304] ss:$12 sps:$4 sm:$0xff]  }
  0x63   :  { %1517 = vmatpush1.bf16.msra.mxu0 %v3551_v42  ;;  %1469 = vmatprep.mubr.bf16.mxu0 %v4024_v15  ;;  %v3637_v15 = vld [vmem:[%s4950_s1 + $0x458] ss:$12 sps:$4 sm:$0xff]   ;;  %v3646_v42 = vld [vmem:[%s4951_s0 + $0x14] ss:$28 sps:$4 sm:$0xff]  }
  0x64   :  { %1518 = vmatprep.subr.bf16.mxu0 %v3561_v43  ;;  %v3641_v43 = vld [vmem:[%s4950_s1 + $0x3c4] ss:$12 sps:$4 sm:$0xff]  }
  0x67   :  { %1969 = vmatmul.mubr.bf16.vlgmr.msra.gmra.mrb[48].mxu1 %v4140_v44  ;;  %1519 = vmatpush1.bf16.msra.mxu0 %v3559_v45  ;;  %v3649_v45 = vld [vmem:[%s4950_s1 + $0x3dc] ss:$12 sps:$4 sm:$0xff]  }
  0x68   :  { %1976 = vmatprep.mubr.bf16.mxu1 %v4152_v47  ;;  %1520 = vmatprep.subr.bf16.mxu0 %v3564_v46  ;;  %v3644_v46 = vld [vmem:[%s4951_s0 + $0x10] ss:$28 sps:$4 sm:$0xff]  }
  0x69   :  { %3085 = vmatpush3.bf16.msra.mxu1 %v3599_v49  ;;  %v3652_v49 = vld [vmem:[%s4950_s1 + $0x3f4] ss:$12 sps:$4 sm:$0xff]  }
  0x6a   :  { %3086 = vmatprep.subr.bf16.mxu1 %v3603_v52  ;;  %1470 = vmatmul.mubr.bf16.gmra.mrb[20].mxu0 %v4054_v23  ;;  %v3605_v23 = vld [vmem:[%s4951_s0 + $0x124] ss:$28 sps:$4 sm:$0xff]  }
  0x6b   :  { %1521 = vmatpush1.bf16.msra.mxu0 %v3562_v50  ;;  %1479 = vmatprep.mubr.bf16.mxu0 %v4062_v25  ;;  %v3600_v25 = vld [vmem:[%s4950_s1 + $0x330] ss:$12 sps:$4 sm:$0xff]   ;;  %v3658_v52 = vld [vmem:[%s4951_s0 + $0x48] ss:$28 sps:$4 sm:$0xff]  }
  0x6c   :  { %1522 = vmatprep.subr.bf16.mxu0 %v3569_v51  ;;  %v3650_v50 = vld [vmem:[%s4950_s1 + $0x3f0] ss:$12 sps:$4 sm:$0xff]   ;;  %v3657_v51 = vld [vmem:[%s4950_s1 + $0x40c] ss:$12 sps:$4 sm:$0xff]  }
  0x6d   :  { %3087 = vmatpush3.bf16.msra.mxu1 %v3604_v53  ;;  %v3655_v53 = vld [vmem:[%s4950_s1 + $0x408] ss:$12 sps:$4 sm:$0xff]  }
  0x6e   :  { %3088 = vmatprep.subr.bf16.mxu1 %v3611_v58  ;;  %v3667_v58 = vld [vmem:[%s4951_s0 + $0x80] ss:$28 sps:$4 sm:$0xff]  }
  0x6f   :  { %1977 = vmatmul.mubr.bf16.gmra.mrb[52].mxu1 %v4182_v55  ;;  %1523 = vmatpush1.bf16.msra.mxu0 %v3567_v54  ;;  %v3662_v54 = vld [vmem:[%s4951_s0 + $0x84] ss:$28 sps:$4 sm:$0xff]  }
  0x70   :  { %1984 = vmatprep.mubr.bf16.mxu1 %v4190_v57  ;;  %1524 = vmatprep.subr.bf16.mxu0 %v3573_v56  ;;  %v3659_v56 = vld [vmem:[%s4950_s1 + $0x420] ss:$12 sps:$4 sm:$0xff]  }
  0x71   :  { %3089 = vmatpush3.bf16.msra.mxu1 %v3612_v59  ;;  %v3664_v59 = vld [vmem:[%s4950_s1 + $0x438] ss:$12 sps:$4 sm:$0xff]  }
  0x72   :  { %3090 = vmatprep.subr.bf16.mxu1 %v3616_v62  ;;  %1480 = vmatmul.mubr.bf16.gmra.mrb[24].mxu0 %v4092_v33  ;;  %v3620_v33 = vld [vmem:[%s4950_s1 + $0x378] ss:$12 sps:$4 sm:$0xff]   ;;  %v3668_v62 = vld [vmem:[%s4950_s1 + $0x450] ss:$12 sps:$4 sm:$0xff]  }
  0x73   :  { %1525 = vmatpush1.bf16.msra.mxu0 %v3571_v60  ;;  %1489 = vmatprep.mubr.bf16.mxu0 %v4098_v34  ;;  %v3623_v34 = vld [vmem:[%s4951_s0 + $0x158] ss:$28 sps:$4 sm:$0xff]  }
  0x74   :  { %1526 = vmatprep.subr.bf16.mxu0 %v3578_v61  ;;  %v3671_v60 = vld [vmem:[%s4951_s0 + $0xbc] ss:$28 sps:$4 sm:$0xff]   ;;  %v3670_v61 = vld [vmem:[%s4950_s1 + $0x454] ss:$12 sps:$4 sm:$0xff]  }
  0x75   :  { %3091 = vmatpush3.bf16.msra.mxu1 %v3617_v63  ;;  %v3675_v63 = vld [vmem:[%s4950_s1 + $0x46c] ss:$12 sps:$4 sm:$0xff]  }
  0x76   :  { %3092 = vmatprep.subr.bf16.mxu1 %v3624_v5  ;;  %v3679_v5 = vld [vmem:[%s4951_s0 + $0xf0] ss:$28 sps:$4 sm:$0xff]  }
  0x77   :  { %1985 = vmatmul.mubr.bf16.gmra.mrb[56].mxu1 %v4220_v2  ;;  %1527 = vmatpush1.bf16.msra.mxu0 %v3576_v0  ;;  %v3676_v0 = vld [vmem:[%s4951_s0 + $0xb8] ss:$28 sps:$4 sm:$0xff]  }
  0x78   :  { %1992 = vmatprep.mubr.bf16.mxu1 %v4228_v4  ;;  %1528 = vmatprep.subr.bf16.mxu0 %v3582_v3  ;;  %v3677_v3 = vld [vmem:[%s4951_s0 + $0xf4] ss:$28 sps:$4 sm:$0xff]  }
  0x79   :  { %3093 = vmatpush3.bf16.msra.mxu1 %v3625_v6  ;;  %v3719_v6 = vld [vmem:[%s4950_s1 + $0x480] ss:$12 sps:$4 sm:$0xff]  }
  0x7a   :  { %3094 = vmatprep.subr.bf16.mxu1 %v3629_v9  ;;  %1490 = vmatmul.mubr.bf16.gmra.mrb[28].mxu0 %v4118_v39  ;;  %v3635_v39 = vld [vmem:[%s4950_s1 + $0x3ac] ss:$12 sps:$4 sm:$0xff]   ;;  %v3683_v9 = vld [vmem:[%s4951_s0 + $0x164] ss:$28 sps:$4 sm:$0xff]  }
  0x7b   :  { %1529 = vmatpush1.bf16.msra.mxu0 %v3580_v7  ;;  %1532 = vmatprep.mubr.bf16.mxu0 %v4124_v40  ;;  %v3636_v40 = vld [vmem:[%s4951_s0 + $0x190] ss:$28 sps:$4 sm:$0xff]  }
  0x7c   :  { %1530 = vmatprep.subr.bf16.mxu0 %v3587_v8  ;;  %v3680_v7 = vld [vmem:[%s4951_s0 + $0x12c] ss:$28 sps:$4 sm:$0xff]  }
  0x7d   :  { %3095 = vmatpush3.bf16.msra.mxu1 %v3630_v10  ;;  %v3682_v8 = vld [vmem:[%s4951_s0 + $0x128] ss:$28 sps:$4 sm:$0xff]   ;;  %v3685_v10 = vld [vmem:[%s4951_s0 + $0x160] ss:$28 sps:$4 sm:$0xff]  }
  0x7e   :  { %3096 = vmatprep.subr.bf16.mxu1 %v3637_v15  ;;  %v3690_v15 = vld [vmem:[%s4951_s0 + $0x18] ss:$28 sps:$4 sm:$0xff]  }
  0x7f   :  { %1993 = vmatmul.mubr.bf16.gmra.mrb[60].mxu1 %v4258_v12  ;;  %1531 = vmatpush1.bf16.msra.mxu0 %v3585_v11  ;;  %v3686_v11 = vld [vmem:[%s4951_s0 + $0x19c] ss:$28 sps:$4 sm:$0xff]  }
  0x80   :  { %2000 = vmatprep.mubr.bf16.mxu1 %v4266_v14  ;;  %1613 = vmatprep.subr.bf16.mxu0 %v3591_v13  ;;  %v3688_v13 = vld [vmem:[%s4951_s0 + $0x198] ss:$28 sps:$4 sm:$0xff]  }
  0x81   :  { %3097 = vmatpush3.bf16.msra.mxu1 %v3638_v16 }
  0x82   :  { %3098 = vmatprep.subr.bf16.mxu1 %v3642_v19  ;;  %1533 = vmatmul.mubr.bf16.vlgmr.msra.gmra.mrb[0].mxu0 %v4140_v44  ;;  %v3639_v44 = vld [vmem:[%s4950_s1 + $0x3c0] ss:$12 sps:$4 sm:$0xff]  }
  0x83   :  { %1614 = vmatpush1.bf16.msra.mxu0 %v3589_v17  ;;  %1542 = vmatprep.mubr.bf16.mxu0 %v4152_v47  ;;  %v3647_v47 = vld [vmem:[%s4950_s1 + $0x3d8] ss:$12 sps:$4 sm:$0xff]   ;;  %v3691_v19 = vld [vmem:[%s4951_s0 + $0x50] ss:$28 sps:$4 sm:$0xff]  }
  0x84   :  { %1615 = vmatprep.subr.bf16.mxu0 %v3596_v18 }
  0x85   :  { %3099 = vmatpush3.bf16.msra.mxu1 %v3643_v20 }
  0x86   :  { %3237 = vmatprep.subr.bf16.mxu1 %v3689_v37 }
  0x87   :  { %2001 = vmatmul.mubr.bf16.gmra.mrb[64].mxu1 %v3597_v22  ;;  %1616 = vmatpush1.bf16.msra.mxu0 %v3594_v21  ;;  %v3692_v21 = vld [vmem:[%s4951_s0 + $0x88] ss:$28 sps:$4 sm:$0xff]  }
  0x88   :  { %2008 = vmatprep.mubr.bf16.mxu1 %v3605_v23  ;;  %1617 = vmatprep.subr.bf16.mxu0 %v3602_v24 }
  0x8a   :  { %1543 = vmatmul.mubr.bf16.gmra.mrb[4].mxu0 %v4182_v55  ;;  %v3661_v55 = vld [vmem:[%s4950_s1 + $0x424] ss:$12 sps:$4 sm:$0xff]  }
  0x8b   :  { %1618 = vmatpush1.bf16.msra.mxu0 %v3600_v25  ;;  %1552 = vmatprep.mubr.bf16.mxu0 %v4190_v57  ;;  %v3666_v57 = vld [vmem:[%s4950_s1 + $0x43c] ss:$12 sps:$4 sm:$0xff]  }
  0x8c   :  { %1619 = vmatprep.subr.bf16.mxu0 %v3609_v26  ;;  %v3693_v25 = vld [vmem:[%s4951_s0 + $0xc0] ss:$28 sps:$4 sm:$0xff]  }
  0x8f   :  { %2009 = vmatmul.mubr.bf16.gmra.mrb[68].mxu1 %v3610_v28  ;;  %1620 = vmatpush1.bf16.msra.mxu0 %v3607_v27 }
  0x90   :  { %2016 = vmatprep.mubr.bf16.mxu1 %v3618_v29  ;;  %1621 = vmatprep.subr.bf16.mxu0 %v3615_v30 }
  0x92   :  { %1553 = vmatmul.mubr.bf16.gmra.mrb[8].mxu0 %v4220_v2  ;;  %v3673_v2 = vld [vmem:[%s4950_s1 + $0x468] ss:$12 sps:$4 sm:$0xff]  }
  0x93   :  { %1622 = vmatpush1.bf16.msra.mxu0 %v3613_v31  ;;  %1562 = vmatprep.mubr.bf16.mxu0 %v4228_v4  ;;  %v3718_v4 = vld [vmem:[%s4950_s1 + $0x484] ss:$12 sps:$4 sm:$0xff]  }
  0x94   :  { %1623 = vmatprep.subr.bf16.mxu0 %v3622_v32 }
  0x97   :  { %2017 = vmatmul.mubr.bf16.gmra.mrb[72].mxu1 %v3623_v34  ;;  %1624 = vmatpush1.bf16.msra.mxu0 %v3620_v33 }
  0x98   :  { %2024 = vmatprep.mubr.bf16.mxu1 %v3631_v35  ;;  %1625 = vmatprep.subr.bf16.mxu0 %v3628_v36 }
  0x9a   :  { %1563 = vmatmul.mubr.bf16.gmra.mrb[12].mxu0 %v4258_v12 }
  0x9b   :  { %1626 = vmatpush1.bf16.msra.mxu0 %v3626_v38  ;;  %1572 = vmatprep.mubr.bf16.mxu0 %v4266_v14 }
  0x9c   :  { %1627 = vmatprep.subr.bf16.mxu0 %v3635_v39 }
  0x9f   :  { %2025 = vmatmul.mubr.bf16.gmra.mrb[76].mxu1 %v3636_v40  ;;  %1628 = vmatpush1.bf16.msra.mxu0 %v3633_v41 }
  0xa0   :  { %2065 = vmatprep.mubr.bf16.mxu1 %v3646_v42  ;;  %1629 = vmatprep.subr.bf16.mxu0 %v3641_v43 }
  0xa2   :  { %1573 = vmatmul.mubr.bf16.gmra.mrb[16].mxu0 %v3597_v22 }
  0xa3   :  { %1630 = vmatpush1.bf16.msra.mxu0 %v3639_v44  ;;  %1582 = vmatprep.mubr.bf16.mxu0 %v3605_v23 }
  0xa4   :  { %1631 = vmatprep.subr.bf16.mxu0 %v3649_v45 }
  0xa7   :  { %2066 = vmatmul.mubr.bf16.vlgmr.msra.gmra.mrb[80].mxu1 %v3644_v46  ;;  %1632 = vmatpush1.bf16.msra.mxu0 %v3647_v47 }
  0xa8   :  { %2073 = vmatprep.mubr.bf16.mxu1 %v3653_v48  ;;  %1633 = vmatprep.subr.bf16.mxu0 %v3652_v49 }
  0xa9   :  { %3238 = vmatpush3.bf16.msra.mxu1 %v3689_v37 }
  0xaa   :  { %1583 = vmatmul.mubr.bf16.gmra.mrb[20].mxu0 %v3610_v28 }
  0xab   :  { %1634 = vmatpush1.bf16.msra.mxu0 %v3650_v50  ;;  %1592 = vmatprep.mubr.bf16.mxu0 %v3618_v29  ;;  %v3720_v29 = vld [vmem:[%s4951_s0 + $0xf8] ss:$28 sps:$4 sm:$0xff]  }
  0xac   :  { %1635 = vmatprep.subr.bf16.mxu0 %v3657_v51 }
  0xaf   :  { %2074 = vmatmul.mubr.bf16.gmra.mrb[84].mxu1 %v3658_v52  ;;  %1636 = vmatpush1.bf16.msra.mxu0 %v3655_v53 }
  0xb0   :  { %2081 = vmatprep.mubr.bf16.mxu1 %v3662_v54  ;;  %1637 = vmatprep.subr.bf16.mxu0 %v3661_v55 }
  0xb2   :  { %1593 = vmatmul.mubr.bf16.gmra.mrb[24].mxu0 %v3623_v34  ;;  %v3721_v34 = vld [vmem:[%s4951_s0 + $0x130] ss:$28 sps:$4 sm:$0xff]  }
  0xb3   :  { %1638 = vmatpush1.bf16.msra.mxu0 %v3659_v56  ;;  %1602 = vmatprep.mubr.bf16.mxu0 %v3631_v35  ;;  %v3722_v35 = vld [vmem:[%s4951_s0 + $0x168] ss:$28 sps:$4 sm:$0xff]  }
  0xb4   :  { %1639 = vmatprep.subr.bf16.mxu0 %v3666_v57 }
  0xb7   :  { %2082 = vmatmul.mubr.bf16.gmra.mrb[88].mxu1 %v3667_v58  ;;  %1640 = vmatpush1.bf16.msra.mxu0 %v3664_v59 }
  0xb8   :  { %2089 = vmatprep.mubr.bf16.mxu1 %v3671_v60  ;;  %1641 = vmatprep.subr.bf16.mxu0 %v3670_v61 }
  0xba   :  { %1603 = vmatmul.mubr.bf16.gmra.mrb[28].mxu0 %v3636_v40 }
  0xbb   :  { %1642 = vmatpush1.bf16.msra.mxu0 %v3668_v62  ;;  %1645 = vmatprep.mubr.bf16.mxu0 %v3646_v42  ;;  %v3723_v42 = vld [vmem:[%s4951_s0 + $0x1a0] ss:$28 sps:$4 sm:$0xff]  }
  0xbc   :  { %1643 = vmatprep.subr.bf16.mxu0 %v3675_v63 }
  0xbf   :  { %2090 = vmatmul.mubr.bf16.gmra.mrb[92].mxu1 %v3676_v0  ;;  %1644 = vmatpush1.bf16.msra.mxu0 %v3673_v2 }
  0xc0   :  { %2097 = vmatprep.mubr.bf16.mxu1 %v3677_v3  ;;  %1726 = vmatprep.subr.bf16.mxu0 %v3718_v4 }
  0xc2   :  { %1646 = vmatmul.mubr.bf16.vlgmr.msra.gmra.mrb[0].mxu0 %v3644_v46 }
  0xc3   :  { %1727 = vmatpush1.bf16.msra.mxu0 %v3719_v6  ;;  %1655 = vmatprep.mubr.bf16.mxu0 %v3653_v48 }
  0xc7   :  { %2098 = vmatmul.mubr.bf16.gmra.mrb[96].mxu1 %v3679_v5 }
  0xc8   :  { %2105 = vmatprep.mubr.bf16.mxu1 %v3680_v7 }
  0xca   :  { %1656 = vmatmul.mubr.bf16.gmra.mrb[4].mxu0 %v3658_v52 }
  0xcb   :  { %1665 = vmatprep.mubr.bf16.mxu0 %v3662_v54 }
  0xcf   :  { %2106 = vmatmul.mubr.bf16.gmra.mrb[100].mxu1 %v3682_v8 }
  0xd0   :  { %2113 = vmatprep.mubr.bf16.mxu1 %v3683_v9 }
  0xd2   :  { %1666 = vmatmul.mubr.bf16.gmra.mrb[8].mxu0 %v3667_v58 }
  0xd3   :  { %1675 = vmatprep.mubr.bf16.mxu0 %v3671_v60 }
  0xd7   :  { %2114 = vmatmul.mubr.bf16.gmra.mrb[104].mxu1 %v3685_v10 }
  0xd8   :  { %2121 = vmatprep.mubr.bf16.mxu1 %v3686_v11 }
  0xda   :  { %v4459_v12 = vpop.f32.mrb[0].mxu1  ;;  %1676 = vmatmul.mubr.bf16.gmra.mrb[12].mxu0 %v3676_v0 }
  0xdb   :  { %v4464_v14 = vpop.f32.mrb[1].mxu1  ;;  %1685 = vmatprep.mubr.bf16.mxu0 %v3677_v3 }
  0xdc   :  { %v4469_v16 = vpop.f32.mrb[2].mxu1 }
  0xdd   :  { %v4471_v17 = vpop.f32.mrb[3].mxu1 }
  0xdf   :  { %2122 = vmatmul.mubr.bf16.gmra.mrb[108].mxu1 %v3688_v13 }
  0xe0   :  { %3239 = vmatprep.mubr.msk.bf16.mxu1 %vm1362_vm0, %v3690_v15 }
  0xe2   :  { %v4474_v18 = vpop.f32.mrb[4].mxu1  ;;  %1686 = vmatmul.mubr.bf16.gmra.mrb[16].mxu0 %v3679_v5 }
  0xe3   :  { %v4479_v20 = vpop.f32.mrb[5].mxu1  ;;  %1695 = vmatprep.mubr.bf16.mxu0 %v3680_v7 }
  0xe4   :  { %v4484_v22 = vpop.f32.mrb[6].mxu1 }
  0xe5   :  { %v4486_v23 = vpop.f32.mrb[7].mxu1 }
  0xe7   :  { %3240 = vmatmul.mubr.msk.bf16.vlgmr.msra.gmra.mrb[112].mxu1 %vm1362_vm0, %v3691_v19 }
  0xe8   :  { %3243 = vmatprep.mubr.msk.bf16.mxu1 %vm1362_vm0, %v3692_v21 }
  0xea   :  { %v4490_v24 = vpop.f32.mrb[8].mxu1  ;;  %1696 = vmatmul.mubr.bf16.gmra.mrb[20].mxu0 %v3682_v8 }
  0xeb   :  { %v4495_v26 = vpop.f32.mrb[9].mxu1  ;;  %1705 = vmatprep.mubr.bf16.mxu0 %v3683_v9 }
  0xec   :  { %v4497_v27 = vpop.f32.mrb[10].mxu1 }
  0xed   :  { %v4499_v28 = vpop.f32.mrb[11].mxu1 }
  0xef   :  { %3244 = vmatmul.mubr.msk.bf16.gmra.mrb[116].mxu1 %vm1362_vm0, %v3693_v25 }
  0xf0   :  { %3247 = vmatprep.mubr.msk.bf16.mxu1 %vm1362_vm0, %v3720_v29 }
  0xf2   :  { %v4506_v30 = vpop.f32.mrb[12].mxu1  ;;  %1706 = vmatmul.mubr.bf16.gmra.mrb[24].mxu0 %v3685_v10  ;;  %v3695_v10 = vld [vmem:[%s4952_s3 + $0x88] sm:$0xff]  }
  0xf3   :  { %v4508_v31 = vpop.f32.mrb[13].mxu1  ;;  %1715 = vmatprep.mubr.bf16.mxu0 %v3686_v11  ;;  %v283_v11 = vlaneseq }
  0xf4   :  { %v4510_v32 = vpop.f32.mrb[14].mxu1 }
  0xf5   :  { %v4512_v33 = vpop.f32.mrb[15].mxu1 }
  0xf7   :  { %3248 = vmatmul.mubr.msk.bf16.gmra.mrb[120].mxu1 %vm1362_vm0, %v3721_v34  ;;  %v4569_v34 = vshrl.u32 %v283_v11, 7  ;;  %v3704_v11 = vld [vmem:[%s4952_s3 + $0x48] sm:$0xff]  }
  0xf8   :  { %3251 = vmatprep.mubr.msk.bf16.mxu1 %vm1362_vm0, %v3722_v35 }
  0xfa   :  { %v2972_v36 = vpop.f32.mrb[16].mxu1  ;;  %1716 = vmatmul.mubr.bf16.gmra.mrb[28].mxu0 %v3688_v13 }
  0xfb   :  { %v2973_v37 = vpop.f32.mrb[17].mxu1  ;;  %1758 = vmatprep.mubr.bf16.mxu0 %v3724_v1 }
  0xfc   :  { %v4523_v38 = vadd.f32 %v2973_v37, %v2972_v36  ;;  %v2975_v39 = vpop.f32.mrb[18].mxu1  ;;  %v3697_v36 = vld [vmem:[%s4952_s3 + $0x98] sm:$0xff]   ;;  %v293_v37 = vsub.s32 2, %v4569_v34 }
  0xfd   :  { %v2976_v40 = vpop.f32.mrb[19].mxu1 }
  0xfe   :  { %v4525_v41 = vadd.f32 %v2976_v40, %v2975_v39  ;;  %v4580_v40 = vld [vmem:[%s4953_s2] sm:$0x7] }
  0xff   :  { %3252 = vmatmul.mubr.msk.bf16.gmra.mrb[124].mxu1 %vm1362_vm0, %v3723_v42 }
 0x102   :  { %v2978_v43 = vpop.f32.mrb[20].mxu1  ;;  %2915 = vmatmul.mubr.msk.bf16.vlgmr.msra.gmra.mrb[0].mxu0 %vm1362_vm0, %v3690_v15 }
 0x103   :  { %v2979_v44 = vpop.f32.mrb[21].mxu1  ;;  %1768 = vmatprep.mubr.bf16.mxu0 %v3724_v1 }
 0x104   :  { %v4533_v45 = vadd.f32 %v2979_v44, %v2978_v43  ;;  %v2981_v46 = vpop.f32.mrb[22].mxu1  ;;  %v3698_v43 = vld [vmem:[%s4952_s3 + $0xa0] sm:$0xff]  }
 0x105   :  { %v2982_v47 = vpop.f32.mrb[23].mxu1 }
 0x106   :  { %v4535_v48 = vadd.f32 %v2982_v47, %v2981_v46 }
 0x10a   :  { %v2984_v49 = vpop.f32.mrb[24].mxu1  ;;  %2916 = vmatmul.mubr.msk.bf16.gmra.mrb[4].mxu0 %vm1362_vm0, %v3691_v19  ;;  %v3696_v19 = vld [vmem:[%s4952_s3 + $0x90] sm:$0xff]  }
 0x10b   :  { %v2985_v50 = vpop.f32.mrb[25].mxu1  ;;  %1778 = vmatprep.mubr.bf16.mxu0 %v3724_v1 }
 0x10c   :  { %v4539_v51 = vadd.f32 %v2985_v50, %v2984_v49  ;;  %v2987_v52 = vpop.f32.mrb[26].mxu1  ;;  %v4588_v49 = vrot.slane %v4580_v40, %v293_v37  ;;  %v3706_v37 = vld [vmem:[%s4952_s3 + $0x50] sm:$0xff]  }
 0x10d   :  { %v2988_v53 = vpop.f32.mrb[27].mxu1 }
 0x10e   :  { %v4541_v54 = vadd.f32 %v2988_v53, %v2987_v52  ;;  %v3699_v52 = vld [vmem:[%s4952_s3 + $0xa8] sm:$0xff]   ;;  %v1874_v53 = vadd.f32 %v4523_v38, %v4588_v49  ;;  %v3701_v38 = vld [vmem:[%s4952_s3 + $0x40] sm:$0xff]  }
 0x10f   :  { %3157 = vmatprep.subr.bf16.mxu1 %v3701_v38 }
 0x112   :  { %v2990_v55 = vpop.f32.mrb[28].mxu1  ;;  %2917 = vmatmul.mubr.msk.bf16.gmra.mrb[8].mxu0 %vm1362_vm0, %v3692_v21 }
 0x113   :  { %v2991_v56 = vpop.f32.mrb[29].mxu1  ;;  %1788 = vmatprep.mubr.bf16.mxu0 %v3724_v1  ;;  %v3694_v1 = vld [vmem:[%s4952_s3 + $0x80] sm:$0xff]  }
 0x114   :  { %v4545_v57 = vadd.f32 %v2991_v56, %v2990_v55  ;;  %v2993_v58 = vpop.f32.mrb[30].mxu1  ;;  %3255 = vmatprep.subr.bf16.mxu0 %v3694_v1 }
 0x115   :  { %v2994_v59 = vpop.f32.mrb[31].mxu1  ;;  %3256 = vmatpush3.bf16.msra.mxu0 %v3694_v1 }
 0x116   :  { %v4547_v60 = vadd.f32 %v2994_v59, %v2993_v58  ;;  %3257 = vmatprep.subr.bf16.mxu0 %v3695_v10  ;;  %v3700_v58 = vld [vmem:[%s4952_s3 + $0xb0] sm:$0xff]   ;;  %v1877_v59 = vadd.f32 %v4525_v41, %v4588_v49  ;;  %v3703_v41 = vld [vmem:[%s4952_s3] sm:$0xff]  }
 0x117   :  { %3158 = vmatpush3.bf16.msra.mxu1 %v3703_v41 }
 0x118   :  { %3159 = vmatprep.subr.bf16.mxu1 %v3704_v11  ;;  %v1901_v41 = vadd.f32 %v4547_v60, %v4588_v49  ;;  %v3715_v60 = vld [vmem:[%s4952_s3 + $0x30] sm:$0xff]  }
 0x119   :  { %3258 = vmatpush3.bf16.msra.mxu0 %v3695_v10 }
 0x11a   :  { %v2996_v61 = vpop.f32.mrb[32].mxu1  ;;  %2918 = vmatmul.mubr.msk.bf16.gmra.mrb[12].mxu0 %vm1362_vm0, %v3693_v25  ;;  %3259 = vmatprep.subr.bf16.mxu0 %v3696_v19 }
 0x11b   :  { %v2997_v62 = vpop.f32.mrb[33].mxu1 }
 0x11c   :  { %v4550_v63 = vadd.f32 %v2997_v62, %v2996_v61  ;;  %v2999_v0 = vpop.f32.mrb[34].mxu1 }
 0x11d   :  { %v3000_v2 = vpop.f32.mrb[35].mxu1  ;;  %3260 = vmatpush3.bf16.msra.mxu0 %v3696_v19 }
 0x11e   :  { %v4552_v3 = vadd.f32 %v3000_v2, %v2999_v0  ;;  %3261 = vmatprep.subr.bf16.mxu0 %v3697_v36 }
 0x121   :  { %3262 = vmatpush3.bf16.msra.mxu0 %v3697_v36 }
 0x122   :  { %v3002_v4 = vpop.f32.mrb[36].mxu1  ;;  %3263 = vmatprep.subr.bf16.mxu0 %v3698_v43 }
 0x123   :  { %v3003_v5 = vpop.f32.mrb[37].mxu1 }
 0x124   :  { %v4557_v6 = vadd.f32 %v3003_v5, %v3002_v4  ;;  %v3005_v7 = vpop.f32.mrb[38].mxu1  ;;  %v3702_v5 = vld [vmem:[%s4952_s3 + $0xb8] sm:$0xff]  }
 0x125   :  { %v3006_v8 = vpop.f32.mrb[39].mxu1  ;;  %3264 = vmatpush3.bf16.msra.mxu0 %v3698_v43 }
 0x126   :  { %v4559_v9 = vadd.f32 %v3006_v8, %v3005_v7  ;;  %3265 = vmatprep.subr.bf16.mxu0 %v3699_v52  ;;  %v1882_v7 = vadd.f32 %v4533_v45, %v4588_v49 }
 0x129   :  { %3266 = vmatpush3.bf16.msra.mxu0 %v3699_v52  ;;  %v1893_v52 = vadd.f32 %v4541_v54, %v4588_v49  ;;  %v3711_v54 = vld [vmem:[%s4952_s3 + $0x20] sm:$0xff]  }
 0x12a   :  { %v3008_v13 = vpop.f32.mrb[40].mxu1  ;;  %3267 = vmatprep.subr.bf16.mxu0 %v3700_v58 }
 0x12b   :  { %v3009_v15 = vpop.f32.mrb[41].mxu1 }
 0x12c   :  { %v4567_v21 = vadd.f32 %v3009_v15, %v3008_v13  ;;  %v3011_v25 = vpop.f32.mrb[42].mxu1  ;;  %v1885_v13 = vadd.f32 %v4535_v48, %v4588_v49  ;;  %v3707_v48 = vld [vmem:[%s4952_s3 + $0x10] sm:$0xff]  }
 0x12d   :  { %v3012_v29 = vpop.f32.mrb[43].mxu1  ;;  %3268 = vmatpush3.bf16.msra.mxu0 %v3700_v58 }
 0x12e   :  { %v4571_v35 = vadd.f32 %v3012_v29, %v3011_v25  ;;  %3269 = vmatprep.subr.bf16.mxu0 %v3702_v5  ;;  %v3705_v25 = vld [vmem:[%s4952_s3 + $0x8] sm:$0xff]  }
 0x12f   :  { %3160 = vmatpush3.bf16.msra.mxu1 %v3705_v25  ;;  %v1906_v25 = vadd.f32 %v4550_v63, %v4588_v49 }
 0x130   :  { %3161 = vmatprep.subr.bf16.mxu1 %v3706_v37  ;;  %v3716_v37 = vld [vmem:[%s4952_s3 + $0x78] sm:$0xff]  }
 0x131   :  { %3270 = vmatpush3.bf16.msra.mxu0 %v3702_v5  ;;  %v3712_v5 = vld [vmem:[%s4952_s3 + $0x68] sm:$0xff]  }
 0x132   :  { %v3014_v39 = vpop.f32.mrb[44].mxu1 }
 0x133   :  { %v3015_v42 = vpop.f32.mrb[45].mxu1  ;;  %3162 = vmatpush3.bf16.msra.mxu1 %v3707_v48  ;;  %v1909_v48 = vadd.f32 %v4552_v3, %v4588_v49  ;;  %v1917_v3 = vadd.f32 %v4559_v9, %v4588_v49 }
 0x134   :  { %v4585_v44 = vadd.f32 %v3015_v42, %v3014_v39  ;;  %v3017_v46 = vpop.f32.mrb[46].mxu1  ;;  %v1890_v42 = vadd.f32 %v4539_v51, %v4588_v49 }
 0x135   :  { %v3018_v47 = vpop.f32.mrb[47].mxu1 }
 0x136   :  { %v4590_v50 = vadd.f32 %v3018_v47, %v3017_v46  ;;  %v3708_v47 = vld [vmem:[%s4952_s3 + $0x58] sm:$0xff]  }
 0x137   :  { %3163 = vmatprep.subr.bf16.mxu1 %v3708_v47 }
 0x13a   :  { %v3036_v55 = vpop.f32.mrb[48].mxu1 }
 0x13b   :  { %v3037_v56 = vpop.f32.mrb[49].mxu1 }
 0x13c   :  { %v3038_v61 = vadd.f32 %v3037_v56, %v3036_v55  ;;  %v3039_v62 = vpop.f32.mrb[50].mxu1  ;;  %v3709_v56 = vld [vmem:[%s4952_s3 + $0x18] sm:$0xff]  }
 0x13d   :  { %v3040_v0 = vpop.f32.mrb[51].mxu1  ;;  %3164 = vmatpush3.bf16.msra.mxu1 %v3709_v56 }
 0x13e   :  { %v4602_v2 = vadd.f32 %v3038_v61, %v1874_v53  ;;  %v3041_v4 = vadd.f32 %v3040_v0, %v3039_v62  ;;  %v3710_v61 = vld [vmem:[%s4952_s3 + $0x60] sm:$0xff]   ;;  %v1898_v0 = vadd.f32 %v4545_v57, %v4588_v49 }
 0x13f   :  { %3165 = vmatprep.subr.bf16.mxu1 %v3710_v61 }
 0x140   :  { %v4610_v1 = vadd.f32 %v3041_v4, %v1877_v59 }
 0x141   :  { %3166 = vmatpush3.bf16.msra.mxu1 %v3711_v54 }
 0x142   :  { %v3042_v8 = vpop.f32.mrb[52].mxu1  ;;  %3167 = vmatprep.subr.bf16.mxu1 %v3712_v5  ;;  %v1922_v5 = vadd.f32 %v4567_v21, %v4588_v49  ;;  %v1933_v21 = vadd.f32 %v4590_v50, %v4588_v49 }
 0x143   :  { %v3043_v10 = vpop.f32.mrb[53].mxu1 }
 0x144   :  { %v3044_v15 = vadd.f32 %v3043_v10, %v3042_v8  ;;  %v3045_v19 = vpop.f32.mrb[54].mxu1  ;;  %v3713_v10 = vld [vmem:[%s4952_s3 + $0x28] sm:$0xff]  }
 0x145   :  { %v3046_v29 = vpop.f32.mrb[55].mxu1  ;;  %3168 = vmatpush3.bf16.msra.mxu1 %v3713_v10 }
 0x146   :  { %v4625_v45 = vadd.f32 %v3044_v15, %v1882_v7  ;;  %v3047_v36 = vadd.f32 %v3046_v29, %v3045_v19  ;;  %v3714_v15 = vld [vmem:[%s4952_s3 + $0x70] sm:$0xff]  }
 0x147   :  { %3169 = vmatprep.subr.bf16.mxu1 %v3714_v15 }
 0x148   :  { %v4630_v39 = vadd.f32 %v3047_v36, %v1885_v13 }
 0x149   :  { %3170 = vmatpush3.bf16.msra.mxu1 %v3715_v60  ;;  %v1930_v60 = vadd.f32 %v4585_v44, %v4588_v49 }
 0x14a   :  { %v3048_v43 = vpop.f32.mrb[56].mxu1  ;;  %3171 = vmatprep.subr.bf16.mxu1 %v3716_v37 }
 0x14b   :  { %v3049_v46 = vpop.f32.mrb[57].mxu1 }
 0x14c   :  { %v3050_v53 = vadd.f32 %v3049_v46, %v3048_v43  ;;  %v3051_v55 = vpop.f32.mrb[58].mxu1  ;;  %v3717_v46 = vld [vmem:[%s4952_s3 + $0x38] sm:$0xff]  }
 0x14d   :  { %v3052_v58 = vpop.f32.mrb[59].mxu1  ;;  %3172 = vmatpush3.bf16.msra.mxu1 %v3717_v46 }
 0x14e   :  { %v4645_v59 = vadd.f32 %v3050_v53, %v1890_v42  ;;  %v3053_v51 = vadd.f32 %v3052_v58, %v3051_v55  ;;  %v1914_v55 = vadd.f32 %v4557_v6, %v4588_v49  ;;  %v1925_v6 = vadd.f32 %v4571_v35, %v4588_v49 }
 0x150   :  { %v4650_v62 = vadd.f32 %v3053_v51, %v1893_v52 }
 0x152   :  { %v3054_v4 = vpop.f32.mrb[60].mxu1 }
 0x153   :  { %v3055_v38 = vpop.f32.mrb[61].mxu1 }
 0x154   :  { %v3056_v7 = vadd.f32 %v3055_v38, %v3054_v4  ;;  %v3057_v8 = vpop.f32.mrb[62].mxu1 }
 0x155   :  { %v3058_v11 = vpop.f32.mrb[63].mxu1 }
 0x156   :  { %v4665_v13 = vadd.f32 %v3056_v7, %v1898_v0  ;;  %v3059_v57 = vadd.f32 %v3058_v11, %v3057_v8 }
 0x158   :  { %v4670_v19 = vadd.f32 %v3059_v57, %v1901_v41 }
 0x15a   :  { %v3060_v29 = vpop.f32.mrb[64].mxu1 }
 0x15b   :  { %v3061_v36 = vpop.f32.mrb[65].mxu1 }
 0x15c   :  { %v3062_v42 = vadd.f32 %v3061_v36, %v3060_v29  ;;  %v3063_v43 = vpop.f32.mrb[66].mxu1 }
 0x15d   :  { %v3064_v47 = vpop.f32.mrb[67].mxu1 }
 0x15e   :  { %v4685_v52 = vadd.f32 %v3062_v42, %v1906_v25  ;;  %v3065_v63 = vadd.f32 %v3064_v47, %v3063_v43 }
 0x160   :  { %v4687_v53 = vadd.f32 %v3065_v63, %v1909_v48 }
 0x162   :  { %v3066_v56 = vpop.f32.mrb[68].mxu1 }
 0x163   :  { %v3067_v58 = vpop.f32.mrb[69].mxu1 }
 0x164   :  { %v3068_v51 = vadd.f32 %v3067_v58, %v3066_v56  ;;  %v3069_v61 = vpop.f32.mrb[70].mxu1 }
 0x165   :  { %v3070_v54 = vpop.f32.mrb[71].mxu1 }
 0x166   :  { %v4693_v0 = vadd.f32 %v3068_v51, %v1914_v55  ;;  %v3071_v4 = vadd.f32 %v3070_v54, %v3069_v61 }
 0x168   :  { %v4695_v38 = vadd.f32 %v3071_v4, %v1917_v3 }
 0x16a   :  { %v3072_v41 = vpop.f32.mrb[72].mxu1 }
 0x16b   :  { %v3073_v7 = vpop.f32.mrb[73].mxu1 }
 0x16c   :  { %v3074_v8 = vadd.f32 %v3073_v7, %v3072_v41  ;;  %v3075_v10 = vpop.f32.mrb[74].mxu1 }
 0x16d   :  { %v3076_v11 = vpop.f32.mrb[75].mxu1 }
 0x16e   :  { %v4701_v9 = vadd.f32 %v3074_v8, %v1922_v5  ;;  %v3077_v57 = vadd.f32 %v3076_v11, %v3075_v10 }
 0x170   :  { %v4703_v15 = vadd.f32 %v3077_v57, %v1925_v6 }
 0x172   :  { %v3078_v25 = vpop.f32.mrb[76].mxu1 }
 0x173   :  { %v3079_v29 = vpop.f32.mrb[77].mxu1 }
 0x174   :  { %v3080_v36 = vadd.f32 %v3079_v29, %v3078_v25  ;;  %v3081_v37 = vpop.f32.mrb[78].mxu1 }
 0x175   :  { %v3082_v48 = vpop.f32.mrb[79].mxu1 }
 0x176   :  { %v4709_v35 = vadd.f32 %v3080_v36, %v1930_v60  ;;  %v3083_v42 = vadd.f32 %v3082_v48, %v3081_v37 }
 0x178   :  { %v4711_v43 = vadd.f32 %v3083_v42, %v1933_v21 }
 0x17a   :  { %v3100_v46 = vpop.f32.mrb[80].mxu1 }
 0x17b   :  { %v3101_v47 = vpop.f32.mrb[81].mxu1 }
 0x17c   :  { %v3102_v63 = vadd.f32 %v3101_v47, %v3100_v46  ;;  %v3103_v55 = vpop.f32.mrb[82].mxu1 }
 0x17d   :  { %v3104_v56 = vpop.f32.mrb[83].mxu1 }
 0x17e   :  { %v3105_v58 = vadd.f32 %v3104_v56, %v3103_v55  ;;  %v4714_v44 = vadd.f32 %v3102_v63, %v4602_v2 }
 0x180   :  { %v4717_v3 = vadd.f32 %v3105_v58, %v4610_v1 }
 0x182   :  { %v3106_v49 = vpop.f32.mrb[84].mxu1 }
 0x183   :  { %v3107_v50 = vpop.f32.mrb[85].mxu1 }
 0x184   :  { %v3108_v51 = vadd.f32 %v3107_v50, %v3106_v49  ;;  %v3109_v61 = vpop.f32.mrb[86].mxu1 }
 0x185   :  { %v3110_v54 = vpop.f32.mrb[87].mxu1 }
 0x186   :  { %v3111_v4 = vadd.f32 %v3110_v54, %v3109_v61  ;;  %v4720_v5 = vadd.f32 %v3108_v51, %v4625_v45 }
 0x188   :  { %v4723_v41 = vadd.f32 %v3111_v4, %v4630_v39 }
 0x18a   :  { %v3112_v7 = vpop.f32.mrb[88].mxu1 }
 0x18b   :  { %v3113_v6 = vpop.f32.mrb[89].mxu1 }
 0x18c   :  { %v3114_v8 = vadd.f32 %v3113_v6, %v3112_v7  ;;  %v3115_v2 = vpop.f32.mrb[90].mxu1 }
 0x18d   :  { %v3116_v10 = vpop.f32.mrb[91].mxu1 }
 0x18e   :  { %v3117_v11 = vadd.f32 %v3116_v10, %v3115_v2  ;;  %v4726_v1 = vadd.f32 %v3114_v8, %v4645_v59  ;;  %v285_v2 = vsub.s32 0, %v4569_v34  ;;  %v289_v10 = vsub.s32 1, %v4569_v34 }
 0x190   :  { %v4729_v57 = vadd.f32 %v3117_v11, %v4650_v62 }
 0x192   :  { %v3118_v60 = vpop.f32.mrb[92].mxu1 }
 0x193   :  { %v3119_v25 = vpop.f32.mrb[93].mxu1 }
 0x194   :  { %v3120_v29 = vadd.f32 %v3119_v25, %v3118_v60  ;;  %v3121_v45 = vpop.f32.mrb[94].mxu1 }
 0x195   :  { %v3122_v21 = vpop.f32.mrb[95].mxu1 }
 0x196   :  { %v3123_v36 = vadd.f32 %v3122_v21, %v3121_v45  ;;  %v4732_v39 = vadd.f32 %v3120_v29, %v4665_v13  ;;  %v4761_v45 = vrot.slane %v4580_v40, %v289_v10 }
 0x198   :  { %v4735_v37 = vadd.f32 %v3123_v36, %v4670_v19 }
 0x19a   :  { %v3124_v48 = vpop.f32.mrb[96].mxu1 }
 0x19b   :  { %v3125_v42 = vpop.f32.mrb[97].mxu1 }
 0x19c   :  { %v3126_v46 = vadd.f32 %v3125_v42, %v3124_v48  ;;  %v3127_v59 = vpop.f32.mrb[98].mxu1 }
 0x19d   :  { %v3128_v47 = vpop.f32.mrb[99].mxu1 }
 0x19e   :  { %v3129_v63 = vadd.f32 %v3128_v47, %v3127_v59  ;;  %v4738_v62 = vadd.f32 %v3126_v46, %v4685_v52 }
 0x1a0   :  { %v4741_v55 = vadd.f32 %v3129_v63, %v4687_v53 }
 0x1a2   :  { %v3130_v56 = vpop.f32.mrb[100].mxu1 }
 0x1a3   :  { %v3131_v58 = vpop.f32.mrb[101].mxu1 }
 0x1a4   :  { %v3132_v49 = vadd.f32 %v3131_v58, %v3130_v56  ;;  %v3133_v13 = vpop.f32.mrb[102].mxu1 }
 0x1a5   :  { %v3134_v50 = vpop.f32.mrb[103].mxu1 }
 0x1a6   :  { %v3135_v51 = vadd.f32 %v3134_v50, %v3133_v13  ;;  %v4744_v19 = vadd.f32 %v3132_v49, %v4693_v0 }
 0x1a8   :  { %v4747_v61 = vadd.f32 %v3135_v51, %v4695_v38  ;;  %v4758_v38 = vrot.slane %v4580_v40, %v285_v2 }
 0x1aa   :  { %v3136_v54 = vpop.f32.mrb[104].mxu1 }
 0x1ab   :  { %v3137_v4 = vpop.f32.mrb[105].mxu1 }
 0x1ac   :  { %v3138_v7 = vadd.f32 %v3137_v4, %v3136_v54  ;;  %v3139_v52 = vpop.f32.mrb[106].mxu1 }
 0x1ad   :  { %v3140_v6 = vpop.f32.mrb[107].mxu1 }
 0x1ae   :  { %v3141_v8 = vadd.f32 %v3140_v6, %v3139_v52  ;;  %v4750_v53 = vadd.f32 %v3138_v7, %v4701_v9 }
 0x1b0   :  { %v4755_v11 = vadd.f32 %v3141_v8, %v4703_v15 }
 0x1b2   :  { %v3142_v0 = vpop.f32.mrb[108].mxu1 }
 0x1b3   :  { %v3143_v60 = vpop.f32.mrb[109].mxu1 }
 0x1b4   :  { %v3144_v25 = vadd.f32 %v3143_v60, %v3142_v0  ;;  %v3145_v29 = vpop.f32.mrb[110].mxu1 }
 0x1b5   :  { %v3146_v21 = vpop.f32.mrb[111].mxu1  ;;  %v1687_v36 = vpop.f32.mrb[16].mxu0 }
 0x1b6   :  { %v3147_v9 = vadd.f32 %v3146_v21, %v3145_v29  ;;  %v4764_v48 = vadd.f32 %v3144_v25, %v4709_v35  ;;  %v3305_v34 = vadd.f32 %v1687_v36, %v4758_v38  ;;  %v1689_v15 = vpop.f32.mrb[17].mxu0 }
 0x1b7   :  { %v3307_v42 = vadd.f32 %v1689_v15, %v4761_v45  ;;  %v1691_v46 = vpop.f32.mrb[18].mxu0 }
 0x1b8   :  { %v4769_v59 = vadd.f32 %v3147_v9, %v4711_v43  ;;  %v3306_v47 = vadd.f32 %v3305_v34, %v4459_v12  ;;  %v3309_v40 = vadd.f32 %v1691_v46, %v4758_v38  ;;  %v1693_v63 = vpop.f32.mrb[19].mxu0 }
 0x1b9   :  { %v3308_v56 = vadd.f32 %v3307_v42, %v4464_v14  ;;  %v3311_v58 = vadd.f32 %v1693_v63, %v4761_v45 }
 0x1ba   :  { %v3241_v35 = vpop.f32.mrb[112].mxu1  ;;  %v3310_v49 = vadd.f32 %v3309_v40, %v4469_v16  ;;  %v2251_v4 = vmax.f32 %v3306_v47, 0.0 }
 0x1bb   :  { %v2173_v13 = vadd.f32 %v3241_v35, %v4720_v5  ;;  %v2164_v50 = vpop.f32.mrb[113].mxu1  ;;  %v3312_v51 = vadd.f32 %v3311_v58, %v4471_v17  ;;  %v2252_v6 = vmax.f32 %v3308_v56, 0.0 }
 0x1bc   :  { %v2165_v43 = vadd.f32 %v2164_v50, %v4714_v44  ;;  %v3242_v54 = vpop.f32.mrb[114].mxu1  ;;  %v2254_v12 = vmax.f32 %v3310_v49, 0.0 }
 0x1bd   :  { %v2176_v7 = vadd.f32 %v3242_v54, %v4723_v41  ;;  %v2167_v52 = vpop.f32.mrb[115].mxu1  ;;  %v2255_v14 = vmax.f32 %v3312_v51, 0.0  ;;  %v1697_v2 = vpop.f32.mrb[20].mxu0  ;;  %v2235_v10 = vmax.f32 %v2173_v13, 0.0 }
 0x1be   :  { %v2168_v8 = vadd.f32 %v2167_v52, %v4717_v3  ;;  %v3313_v5 = vadd.f32 %v1697_v2, %v4758_v38  ;;  %v1699_v0 = vpop.f32.mrb[21].mxu0  ;;  %v4782_v60 = vpack.c.bf16 %v2254_v12, %v2251_v4  ;;  %v2229_v17 = vmax.f32 %v2165_v43, 0.0 }
 0x1bf   :  { %v2238_v16 = vmax.f32 %v2176_v7, 0.0  ;;  %v3315_v25 = vadd.f32 %v1699_v0, %v4761_v45  ;;  %v1701_v29 = vpop.f32.mrb[22].mxu0  ;;  %v4785_v21 = vpack.c.bf16 %v2255_v14, %v2252_v6 }
 0x1c0   :  { %v2232_v44 = vmax.f32 %v2168_v8, 0.0  ;;  %v3314_v9 = vadd.f32 %v3313_v5, %v4474_v18  ;;  %v3317_v3 = vadd.f32 %v1701_v29, %v4758_v38  ;;  %v1703_v36 = vpop.f32.mrb[23].mxu0 }
 0x1c1   :  { %v2280_v41 = vpack.c.bf16 %v2238_v16, %v2235_v10  ;;  %v3316_v15 = vadd.f32 %v3315_v25, %v4479_v20  ;;  %v3319_v42 = vadd.f32 %v1703_v36, %v4761_v45 }
 0x1c2   :  { %v2277_v34 = vpack.c.bf16 %v2232_v44, %v2229_v17  ;;  %v3245_v46 = vpop.f32.mrb[116].mxu1  ;;  %v3318_v47 = vadd.f32 %v3317_v3, %v4484_v22  ;;  %v2257_v18 = vmax.f32 %v3314_v9, 0.0 }
 0x1c3   :  { %v2189_v40 = vadd.f32 %v3245_v46, %v4732_v39  ;;  %v2180_v63 = vpop.f32.mrb[117].mxu1  ;;  %v3320_v56 = vadd.f32 %v3319_v42, %v4486_v23  ;;  %v2258_v20 = vmax.f32 %v3316_v15, 0.0 }
 0x1c4   :  { %v2181_v58 = vadd.f32 %v2180_v63, %v4726_v1  ;;  %v3246_v35 = vpop.f32.mrb[118].mxu1  ;;  %3271 = vmatprep.mubr.bf16.mxu0 %v2277_v34  ;;  %v2260_v49 = vmax.f32 %v3318_v47, 0.0 }
 0x1c5   :  { %v2192_v13 = vadd.f32 %v3246_v35, %v4735_v37  ;;  %v2183_v50 = vpop.f32.mrb[119].mxu1  ;;  %3272 = vmatmul.mubr.bf16.vlgmr.msra.gmra.mrb[32].mxu0 %v2280_v41  ;;  %v2261_v51 = vmax.f32 %v3320_v56, 0.0  ;;  %v1707_v22 = vpop.f32.mrb[24].mxu0  ;;  %v2247_v54 = vmax.f32 %v2189_v40, 0.0 }
 0x1c6   :  { %v2184_v43 = vadd.f32 %v2183_v50, %v4729_v57  ;;  %v3321_v4 = vadd.f32 %v1707_v22, %v4758_v38  ;;  %v1709_v23 = vpop.f32.mrb[25].mxu0  ;;  %v4798_v12 = vpack.c.bf16 %v2260_v49, %v2257_v18  ;;  %v2241_v1 = vmax.f32 %v2181_v58, 0.0 }
 0x1c7   :  { %v2250_v39 = vmax.f32 %v2192_v13, 0.0  ;;  %v3323_v52 = vadd.f32 %v1709_v23, %v4761_v45  ;;  %v1711_v6 = vpop.f32.mrb[26].mxu0  ;;  %v4801_v37 = vpack.c.bf16 %v2261_v51, %v2258_v20 }
 0x1c8   :  { %v2244_v7 = vmax.f32 %v2184_v43, 0.0  ;;  %v3322_v8 = vadd.f32 %v3321_v4, %v4490_v24  ;;  %v3325_v57 = vadd.f32 %v1711_v6, %v4758_v38  ;;  %v1713_v2 = vpop.f32.mrb[27].mxu0 }
 0x1c9   :  { %v2286_v14 = vpack.c.bf16 %v2250_v39, %v2247_v54  ;;  %v3324_v16 = vadd.f32 %v3323_v52, %v4495_v26  ;;  %v3327_v5 = vadd.f32 %v1713_v2, %v4761_v45 }
 0x1ca   :  { %v2283_v10 = vpack.c.bf16 %v2244_v7, %v2241_v1  ;;  %v3249_v0 = vpop.f32.mrb[120].mxu1  ;;  %v3326_v17 = vadd.f32 %v3325_v57, %v4497_v27  ;;  %v2263_v24 = vmax.f32 %v3322_v8, 0.0 }
 0x1cb   :  { %v2205_v44 = vadd.f32 %v3249_v0, %v4744_v19  ;;  %v2196_v25 = vpop.f32.mrb[121].mxu1  ;;  %v3328_v29 = vadd.f32 %v3327_v5, %v4499_v28  ;;  %v2264_v26 = vmax.f32 %v3324_v16, 0.0 }
 0x1cc   :  { %v2197_v41 = vadd.f32 %v2196_v25, %v4738_v62  ;;  %v3250_v9 = vpop.f32.mrb[122].mxu1  ;;  %3275 = vmatprep.mubr.bf16.mxu0 %v2283_v10  ;;  %v2266_v3 = vmax.f32 %v3326_v17, 0.0 }
 0x1cd   :  { %v2208_v36 = vadd.f32 %v3250_v9, %v4747_v61  ;;  %v2199_v34 = vpop.f32.mrb[123].mxu1  ;;  %3276 = vmatmul.mubr.bf16.gmra.mrb[36].mxu0 %v2286_v14  ;;  %v2267_v15 = vmax.f32 %v3328_v29, 0.0  ;;  %v1717_v27 = vpop.f32.mrb[28].mxu0  ;;  %v2259_v46 = vmax.f32 %v2205_v44, 0.0 }
 0x1ce   :  { %v2200_v42 = vadd.f32 %v2199_v34, %v4741_v55  ;;  %v3329_v47 = vadd.f32 %v1717_v27, %v4758_v38  ;;  %v1719_v28 = vpop.f32.mrb[29].mxu0  ;;  %v4814_v40 = vpack.c.bf16 %v2266_v3, %v2263_v24  ;;  %v2253_v62 = vmax.f32 %v2197_v41, 0.0 }
 0x1cf   :  { %v2262_v19 = vmax.f32 %v2208_v36, 0.0  ;;  %v3331_v56 = vadd.f32 %v1719_v28, %v4761_v45  ;;  %v1721_v58 = vpop.f32.mrb[30].mxu0  ;;  %v4817_v61 = vpack.c.bf16 %v2267_v15, %v2264_v26 }
 0x1d0   :  { %v2256_v63 = vmax.f32 %v2200_v42, 0.0  ;;  %v3330_v18 = vadd.f32 %v3329_v47, %v4506_v30  ;;  %v3333_v55 = vadd.f32 %v1721_v58, %v4758_v38  ;;  %v1723_v49 = vpop.f32.mrb[31].mxu0 }
 0x1d1   :  { %v2292_v35 = vpack.c.bf16 %v2262_v19, %v2259_v46  ;;  %v3332_v50 = vadd.f32 %v3331_v56, %v4508_v31  ;;  %v3335_v20 = vadd.f32 %v1723_v49, %v4761_v45 }
 0x1d2   :  { %v2289_v13 = vpack.c.bf16 %v2256_v63, %v2253_v62  ;;  %v3253_v51 = vpop.f32.mrb[124].mxu1  ;;  %v3334_v43 = vadd.f32 %v3333_v55, %v4510_v32  ;;  %v2269_v30 = vmax.f32 %v3330_v18, 0.0 }
 0x1d3   :  { %v2221_v22 = vadd.f32 %v3253_v51, %v4764_v48  ;;  %v2212_v54 = vpop.f32.mrb[125].mxu1  ;;  %v3336_v39 = vadd.f32 %v3335_v20, %v4512_v33  ;;  %v2270_v31 = vmax.f32 %v3332_v50, 0.0 }
 0x1d4   :  { %v2213_v4 = vadd.f32 %v2212_v54, %v4750_v53  ;;  %v3254_v23 = vpop.f32.mrb[126].mxu1  ;;  %3279 = vmatprep.mubr.bf16.mxu0 %v2289_v13  ;;  %v2272_v1 = vmax.f32 %v3334_v43, 0.0 }
 0x1d5   :  { %v2224_v7 = vadd.f32 %v3254_v23, %v4769_v59  ;;  %v2215_v52 = vpop.f32.mrb[127].mxu1  ;;  %3280 = vmatmul.mubr.bf16.gmra.mrb[40].mxu0 %v2292_v35  ;;  %v2273_v6 = vmax.f32 %v3336_v39, 0.0  ;;  %v1760_v32 = vpop.f32.mrb[0].mxu0  ;;  %v2271_v8 = vmax.f32 %v2221_v22, 0.0 }
 0x1d6   :  { %v2216_v14 = vadd.f32 %v2215_v52, %v4755_v11  ;;  %v3289_v57 = vadd.f32 %v1760_v32, %v4758_v38  ;;  %v1762_v33 = vpop.f32.mrb[1].mxu0  ;;  %v4830_v2 = vpack.c.bf16 %v2272_v1, %v2269_v30  ;;  %v2265_v53 = vmax.f32 %v2213_v4, 0.0 }
 0x1d7   :  { %v2274_v48 = vmax.f32 %v2224_v7, 0.0  ;;  %v3290_v16 = vadd.f32 %v1762_v33, %v4761_v45  ;;  %v1764_v5 = vpop.f32.mrb[2].mxu0  ;;  %v4833_v59 = vpack.c.bf16 %v2273_v6, %v2270_v31 }
 0x1d8   :  { %v2268_v10 = vmax.f32 %v2216_v14, 0.0  ;;  %v3291_v17 = vadd.f32 %v1764_v5, %v4758_v38  ;;  %v1766_v44 = vpop.f32.mrb[3].mxu0  ;;  %v2227_v29 = vmax.f32 %v3289_v57, 0.0 }
 0x1d9   :  { %v2298_v0 = vpack.c.bf16 %v2274_v48, %v2271_v8  ;;  %v3292_v25 = vadd.f32 %v1766_v44, %v4761_v45  ;;  %v2228_v9 = vmax.f32 %v3290_v16, 0.0 }
 0x1da   :  { %v2295_v11 = vpack.c.bf16 %v2268_v10, %v2265_v53  ;;  %v2230_v41 = vmax.f32 %v3291_v17, 0.0 }
 0x1db   :  { %v2231_v24 = vmax.f32 %v3292_v25, 0.0 }
 0x1dc   :  { %3283 = vmatprep.mubr.bf16.mxu0 %v2295_v11  ;;  %v2275_v3 = vpack.c.bf16 %v2230_v41, %v2227_v29  ;;  %v4876_v41 = vld [vmem:[%s4954_s4] ss:$0 sm:$0xff] }
 0x1dd   :  { %3284 = vmatmul.mubr.bf16.gmra.mrb[44].mxu0 %v2298_v0  ;;  %v2276_v36 = vpack.c.bf16 %v2231_v24, %v2228_v9  ;;  %v1770_v34 = vpop.f32.mrb[4].mxu0 }
 0x1de   :  { %v3293_v26 = vadd.f32 %v1770_v34, %v4758_v38  ;;  %v1772_v15 = vpop.f32.mrb[5].mxu0 }
 0x1df   :  { %v3294_v42 = vadd.f32 %v1772_v15, %v4761_v45  ;;  %v1774_v27 = vpop.f32.mrb[6].mxu0  ;;  %2530 = vmatprep.mubr.bf16.mxu1 %v2276_v36 }
 0x1e0   :  { %v3295_v46 = vadd.f32 %v1774_v27, %v4758_v38  ;;  %v1776_v19 = vpop.f32.mrb[7].mxu0  ;;  %2531 = vmatmul.mubr.bf16.vlgmr.msra.gmra.mrb[128].mxu1 %v2275_v3  ;;  %v2233_v28 = vmax.f32 %v3293_v26, 0.0 }
 0x1e1   :  { %v3296_v47 = vadd.f32 %v1776_v19, %v4761_v45  ;;  %v2234_v63 = vmax.f32 %v3294_v42, 0.0 }
 0x1e2   :  { %v2236_v62 = vmax.f32 %v3295_v46, 0.0 }
 0x1e3   :  { %v2237_v56 = vmax.f32 %v3296_v47, 0.0 }
 0x1e4   :  { %v2278_v58 = vpack.c.bf16 %v2236_v62, %v2233_v28 }
 0x1e5   :  { %v2279_v35 = vpack.c.bf16 %v2237_v56, %v2234_v63  ;;  %v1780_v18 = vpop.f32.mrb[8].mxu0 }
 0x1e6   :  { %v3297_v55 = vadd.f32 %v1780_v18, %v4758_v38  ;;  %v1782_v49 = vpop.f32.mrb[9].mxu0 }
 0x1e7   :  { %v3298_v13 = vadd.f32 %v1782_v49, %v4761_v45  ;;  %v1784_v50 = vpop.f32.mrb[10].mxu0  ;;  %2538 = vmatprep.mubr.bf16.mxu1 %v2279_v35 }
 0x1e8   :  { %v3299_v20 = vadd.f32 %v1784_v50, %v4758_v38  ;;  %v1786_v51 = vpop.f32.mrb[11].mxu0  ;;  %2539 = vmatmul.mubr.bf16.gmra.mrb[132].mxu1 %v2278_v58  ;;  %v2239_v22 = vmax.f32 %v3297_v55, 0.0 }
 0x1e9   :  { %v3300_v43 = vadd.f32 %v1786_v51, %v4761_v45  ;;  %v2240_v39 = vmax.f32 %v3298_v13, 0.0 }
 0x1ea   :  { %v2242_v54 = vmax.f32 %v3299_v20, 0.0 }
 0x1eb   :  { %v2243_v4 = vmax.f32 %v3300_v43, 0.0 }
 0x1ec   :  { %v2281_v23 = vpack.c.bf16 %v2242_v54, %v2239_v22 }
 0x1ed   :  { %v2282_v30 = vpack.c.bf16 %v2243_v4, %v2240_v39  ;;  %v1790_v1 = vpop.f32.mrb[12].mxu0 }
 0x1ee   :  { %v3301_v7 = vadd.f32 %v1790_v1, %v4758_v38  ;;  %v1792_v52 = vpop.f32.mrb[13].mxu0 }
 0x1ef   :  { %v3302_v31 = vadd.f32 %v1792_v52, %v4761_v45  ;;  %v1794_v6 = vpop.f32.mrb[14].mxu0  ;;  %2546 = vmatprep.mubr.bf16.mxu1 %v2282_v30 }
 0x1f0   :  { %v3303_v14 = vadd.f32 %v1794_v6, %v4758_v38  ;;  %v1796_v32 = vpop.f32.mrb[15].mxu0  ;;  %2547 = vmatmul.mubr.bf16.gmra.mrb[136].mxu1 %v2281_v23  ;;  %v2245_v48 = vmax.f32 %v3301_v7, 0.0 }
 0x1f1   :  { %v3304_v8 = vadd.f32 %v1796_v32, %v4761_v45  ;;  %v2246_v33 = vmax.f32 %v3302_v31, 0.0 }
 0x1f2   :  { %v2248_v57 = vmax.f32 %v3303_v14, 0.0 }
 0x1f3   :  { %v2249_v53 = vmax.f32 %v3304_v8, 0.0 }
 0x1f4   :  { %v2284_v10 = vpack.c.bf16 %v2248_v57, %v2245_v48 }
 0x1f5   :  { %v2285_v16 = vpack.c.bf16 %v2249_v53, %v2246_v33 }
 0x1f7   :  { %2554 = vmatprep.mubr.bf16.mxu1 %v2285_v16 }
 0x1f8   :  { %2555 = vmatmul.mubr.bf16.gmra.mrb[140].mxu1 %v2284_v10 }
 0x1f9   :  { %2562 = vmatprep.mubr.bf16.mxu1 %v4785_v21 }
 0x200   :  { %2563 = vmatmul.mubr.bf16.gmra.mrb[144].mxu1 %v4782_v60 }
 0x201   :  { %2570 = vmatprep.mubr.bf16.mxu1 %v4801_v37 }
 0x208   :  { %2571 = vmatmul.mubr.bf16.gmra.mrb[148].mxu1 %v4798_v12 }
 0x209   :  { %2578 = vmatprep.mubr.bf16.mxu1 %v4817_v61 }
 0x210   :  { %2579 = vmatmul.mubr.bf16.gmra.mrb[152].mxu1 %v4814_v40 }
 0x211   :  { %2586 = vmatprep.mubr.bf16.mxu1 %v4833_v59 }
 0x218   :  { %2587 = vmatmul.mubr.bf16.gmra.mrb[156].mxu1 %v4830_v2 }
 0x298   :  { %v3273_v38 = vpop.f32.mrb[32].mxu0 }
 0x299   :  { %v2629_v45 = vpop.f32.mrb[33].mxu0 }
 0x29a   :  { %v3274_v5 = vpop.f32.mrb[34].mxu0 }
 0x29b   :  { %v2632_v0 = vpop.f32.mrb[35].mxu0 }
 0x2a0   :  { %v3277_v17 = vpop.f32.mrb[36].mxu0 }
 0x2a1   :  { %v2645_v21 = vpop.f32.mrb[37].mxu0 }
 0x2a2   :  { %v3278_v44 = vpop.f32.mrb[38].mxu0 }
 0x2a3   :  { %v2648_v60 = vpop.f32.mrb[39].mxu0 }
 0x2a8   :  { %v4857_v11 = vpop.f32.mrb[40].mxu0 }
 0x2a9   :  { %v4859_v37 = vpop.f32.mrb[41].mxu0 }
 0x2aa   :  { %v4861_v12 = vpop.f32.mrb[42].mxu0 }
 0x2ab   :  { %v4863_v61 = vpop.f32.mrb[43].mxu0 }
 0x2b0   :  { %v4865_v40 = vpop.f32.mrb[44].mxu0 }
 0x2b1   :  { %v4867_v59 = vpop.f32.mrb[45].mxu0 }
 0x2b2   :  { %v4869_v2 = vpop.f32.mrb[46].mxu0 }
 0x2b3   :  { %v4871_v25 = vpop.f32.mrb[47].mxu0  ;;  %v3173_v29 = vpop.f32.mrb[128].mxu1 }
 0x2b4   :  { %v3174_v9 = vpop.f32.mrb[129].mxu1 }
 0x2b5   :  { %v3175_v24 = vadd.f32 %v3174_v9, %v3173_v29  ;;  %v3176_v3 = vpop.f32.mrb[130].mxu1 }
 0x2b6   :  { %v3177_v36 = vpop.f32.mrb[131].mxu1 }
 0x2b7   :  { %v2533_v34 = vadd.f32 %v3175_v24, %v4876_v41  ;;  %v3178_v26 = vadd.f32 %v3177_v36, %v3176_v3 }
 0x2b9   :  { %v2630_v15 = vadd.f32 %v2629_v45, %v2533_v34  ;;  %v2536_v42 = vadd.f32 %v3178_v26, %v4876_v41 }
 0x2bb   :  { %2692 = vst [vmem:[%s4955_s5] sm:$0xff] %v2630_v15  ;;  %v2633_v27 = vadd.f32 %v2632_v0, %v2536_v42  ;;  %v3179_v46 = vpop.f32.mrb[132].mxu1 }
 0x2bc   :  { %v3180_v19 = vpop.f32.mrb[133].mxu1 }
 0x2bd   :  { %2693 = vst [vmem:[%s4955_s5 + $0x8] sm:$0xff] %v2633_v27  ;;  %v3181_v47 = vadd.f32 %v3180_v19, %v3179_v46  ;;  %v3182_v28 = vpop.f32.mrb[134].mxu1 }
 0x2be   :  { %v3183_v62 = vpop.f32.mrb[135].mxu1 }
 0x2bf   :  { %v2541_v63 = vadd.f32 %v3181_v47, %v4876_v41  ;;  %v3184_v56 = vadd.f32 %v3183_v62, %v3182_v28 }
 0x2c1   :  { %v2638_v58 = vadd.f32 %v3273_v38, %v2541_v63  ;;  %v2544_v35 = vadd.f32 %v3184_v56, %v4876_v41 }
 0x2c3   :  { %2694 = vst [vmem:[%s4955_s5 + $0x10] sm:$0xff] %v2638_v58  ;;  %v2641_v18 = vadd.f32 %v3274_v5, %v2544_v35  ;;  %v3185_v55 = vpop.f32.mrb[136].mxu1 }
 0x2c4   :  { %v3186_v49 = vpop.f32.mrb[137].mxu1 }
 0x2c5   :  { %2695 = vst [vmem:[%s4955_s5 + $0x18] sm:$0xff] %v2641_v18  ;;  %v3187_v13 = vadd.f32 %v3186_v49, %v3185_v55  ;;  %v3188_v50 = vpop.f32.mrb[138].mxu1 }
 0x2c6   :  { %v3189_v20 = vpop.f32.mrb[139].mxu1 }
 0x2c7   :  { %v2549_v51 = vadd.f32 %v3187_v13, %v4876_v41  ;;  %v3190_v43 = vadd.f32 %v3189_v20, %v3188_v50 }
 0x2c9   :  { %v2646_v22 = vadd.f32 %v2645_v21, %v2549_v51  ;;  %v2552_v54 = vadd.f32 %v3190_v43, %v4876_v41 }
 0x2cb   :  { %2696 = vst [vmem:[%s4955_s5 + $0x20] sm:$0xff] %v2646_v22  ;;  %v2649_v39 = vadd.f32 %v2648_v60, %v2552_v54  ;;  %v3191_v4 = vpop.f32.mrb[140].mxu1 }
 0x2cc   :  { %v3192_v23 = vpop.f32.mrb[141].mxu1 }
 0x2cd   :  { %2697 = vst [vmem:[%s4955_s5 + $0x28] sm:$0xff] %v2649_v39  ;;  %v3193_v30 = vadd.f32 %v3192_v23, %v3191_v4  ;;  %v3194_v1 = vpop.f32.mrb[142].mxu1 }
 0x2ce   :  { %v3195_v7 = vpop.f32.mrb[143].mxu1 }
 0x2cf   :  { %v2557_v52 = vadd.f32 %v3193_v30, %v4876_v41  ;;  %v3196_v31 = vadd.f32 %v3195_v7, %v3194_v1 }
 0x2d1   :  { %v2654_v6 = vadd.f32 %v3277_v17, %v2557_v52  ;;  %v2560_v14 = vadd.f32 %v3196_v31, %v4876_v41 }
 0x2d3   :  { %2698 = vst [vmem:[%s4955_s5 + $0x30] sm:$0xff] %v2654_v6  ;;  %v2657_v32 = vadd.f32 %v3278_v44, %v2560_v14  ;;  %v3197_v8 = vpop.f32.mrb[144].mxu1 }
 0x2d4   :  { %v3198_v48 = vpop.f32.mrb[145].mxu1 }
 0x2d5   :  { %2699 = vst [vmem:[%s4955_s5 + $0x38] sm:$0xff] %v2657_v32  ;;  %v3199_v57 = vadd.f32 %v3198_v48, %v3197_v8  ;;  %v3200_v33 = vpop.f32.mrb[146].mxu1 }
 0x2d6   :  { %v3201_v53 = vpop.f32.mrb[147].mxu1 }
 0x2d7   :  { %v2565_v10 = vadd.f32 %v3199_v57, %v4876_v41  ;;  %v3202_v16 = vadd.f32 %v3201_v53, %v3200_v33 }
 0x2d9   :  { %v2662_v38 = vadd.f32 %v4859_v37, %v2565_v10  ;;  %v2568_v45 = vadd.f32 %v3202_v16, %v4876_v41 }
 0x2db   :  { %2700 = vst [vmem:[%s4955_s5 + $0x40] sm:$0xff] %v2662_v38  ;;  %v2665_v5 = vadd.f32 %v4863_v61, %v2568_v45  ;;  %v3203_v0 = vpop.f32.mrb[148].mxu1 }
 0x2dc   :  { %v3204_v17 = vpop.f32.mrb[149].mxu1 }
 0x2dd   :  { %2701 = vst [vmem:[%s4955_s5 + $0x48] sm:$0xff] %v2665_v5  ;;  %v3205_v21 = vadd.f32 %v3204_v17, %v3203_v0  ;;  %v3206_v44 = vpop.f32.mrb[150].mxu1 }
 0x2de   :  { %v3207_v60 = vpop.f32.mrb[151].mxu1 }
 0x2df   :  { %v2573_v29 = vadd.f32 %v3205_v21, %v4876_v41  ;;  %v3208_v37 = vadd.f32 %v3207_v60, %v3206_v44 }
 0x2e1   :  { %v2670_v9 = vadd.f32 %v4857_v11, %v2573_v29  ;;  %v2576_v24 = vadd.f32 %v3208_v37, %v4876_v41 }
 0x2e3   :  { %2702 = vst [vmem:[%s4955_s5 + $0x50] sm:$0xff] %v2670_v9  ;;  %v2673_v61 = vadd.f32 %v4861_v12, %v2576_v24  ;;  %v3209_v3 = vpop.f32.mrb[152].mxu1 }
 0x2e4   :  { %v3210_v36 = vpop.f32.mrb[153].mxu1 }
 0x2e5   :  { %2703 = vst [vmem:[%s4955_s5 + $0x58] sm:$0xff] %v2673_v61  ;;  %v3211_v34 = vadd.f32 %v3210_v36, %v3209_v3  ;;  %v3212_v26 = vpop.f32.mrb[154].mxu1 }
 0x2e6   :  { %v3213_v15 = vpop.f32.mrb[155].mxu1 }
 0x2e7   :  { %v2581_v42 = vadd.f32 %v3211_v34, %v4876_v41  ;;  %v3214_v11 = vadd.f32 %v3213_v15, %v3212_v26 }
 0x2e9   :  { %v2678_v27 = vadd.f32 %v4867_v59, %v2581_v42  ;;  %v2584_v46 = vadd.f32 %v3214_v11, %v4876_v41 }
 0x2eb   :  { %2704 = vst [vmem:[%s4955_s5 + $0x60] sm:$0xff] %v2678_v27  ;;  %v2681_v12 = vadd.f32 %v4871_v25, %v2584_v46  ;;  %v3215_v19 = vpop.f32.mrb[156].mxu1 }
 0x2ec   :  { %v3216_v47 = vpop.f32.mrb[157].mxu1 }
 0x2ed   :  { %2705 = vst [vmem:[%s4955_s5 + $0x68] sm:$0xff] %v2681_v12  ;;  %v3217_v28 = vadd.f32 %v3216_v47, %v3215_v19  ;;  %v3218_v62 = vpop.f32.mrb[158].mxu1 }
 0x2ee   :  { %v3219_v63 = vpop.f32.mrb[159].mxu1 }
 0x2ef   :  { %v2589_v56 = vadd.f32 %v3217_v28, %v4876_v41  ;;  %v3220_v59 = vadd.f32 %v3219_v63, %v3218_v62 }
 0x2f1   :  { %v2686_v58 = vadd.f32 %v4865_v40, %v2589_v56  ;;  %v2592_v35 = vadd.f32 %v3220_v59, %v4876_v41 }
 0x2f3   :  { %2706 = vst [vmem:[%s4955_s5 + $0x70] sm:$0xff] %v2686_v58  ;;  %v2689_v25 = vadd.f32 %v4869_v2, %v2592_v35 }
 0x2f5   :  { %2707 = vst [vmem:[%s4955_s5 + $0x78] sm:$0xff] %v2689_v25 }

</bundles_post_ra>
